<compile_context>
chip_gen: v7x
topology: tpu7x:2x2x1
jax: 0.10.0
libtpu: 0.0.40
codegen_flags: <defaults>
</compile_context>

<pallas_src>
import math

import jax
import jax.numpy as jnp
import numpy as np
from jax.experimental import pallas as pl
from jax.experimental.pallas import tpu as pltpu


_VMEM_TILE_BUDGET = 14 * 1024 * 1024   # working-set budget (incl. double buffering) for tiles
_VMEM_LIMIT_BYTES = 32 * 1024 * 1024   # scoped VMEM limit: >= defaults everywhere, <= v7x physical
_LOG2E = math.log2(math.e)


# ---------------------------------------------------------------------------
# tile selection helpers
# ---------------------------------------------------------------------------
def _tile_candidates(dim, quantum, cap):
    """Divisors of `dim` that are multiples of `quantum` (plus dim itself), descending, <= cap."""
    cands = {dim}
    for t in range(quantum, dim, quantum):
        if dim % t == 0:
            cands.add(t)
    cands = sorted(cands, reverse=True)
    capped = [t for t in cands if t <= cap]
    return capped if capped else [min(cands)]   # fallback: full dim (always legal)


def _select_linear_tiles(M, K, N, xb, wb, ob, needs_acc):
    """Prefer tn -> N (activation read once), then large tm (fewer weight re-reads), then tk."""
    tm_c = _tile_candidates(M, 8, 512)
    tk_c = _tile_candidates(K, 128, 1024)
    tn_c = _tile_candidates(N, 128, 4096)
    for tn in tn_c:
        for tm in tm_c:
            for tk in tk_c:
                vmem = (2 * tm * tk * xb + 2 * tk * tn * wb + 2 * tm * tn * ob
                        + (tm * tn * 4 if needs_acc else 0))
                if vmem <= _VMEM_TILE_BUDGET:
                    return tm, tk, tn
    return tm_c[-1], tk_c[-1], tn_c[-1]


def _select_attn_tiles(N, Dh, qb, ob):
    """Prefer tkv -> N (single kv step, K/V streamed once), then the largest tq that fits."""
    tq_c = _tile_candidates(N, 8, 1024)
    tkv_c = _tile_candidates(N, 8, 4096)
    for tkv in tkv_c:
        for tq in tq_c:
            vmem = (2 * tq * Dh * qb            # q tile (double buffered)
                    + 2 * 2 * tkv * Dh * qb     # k + v tiles
                    + 2 * tq * Dh * ob          # o tile
                    + tq * Dh * 4 + 8 * tq      # acc + m + l scratch
                    + 2 * tq * tkv * 4)         # s / p f32 temporaries
            if vmem <= _VMEM_TILE_BUDGET:
                return tq, tkv
    return tq_c[-1], tkv_c[-1]


# ---------------------------------------------------------------------------
# Tiled GEMM (+ optional bias): out = x @ w (+ b)
#   grid = (M/tm, N/tn, K/tk); K axis last ("arbitrary"); bf16 MXU operands, f32 accumulation.
#   f32 outputs accumulate directly into the resident o_ref (no scratch).
# ---------------------------------------------------------------------------
def _make_matmul_kernel(has_bias, direct_out):
    def kernel(*refs):
        if has_bias:
            x_ref, w_ref, b_ref = refs[:3]
            rest = refs[3:]
        else:
            x_ref, w_ref = refs[:2]
            b_ref = None
            rest = refs[2:]
        if direct_out:
            (o_ref,) = rest
            acc_ref = o_ref            # f32 output block is resident along k -> accumulate in place
        else:
            o_ref, acc_ref = rest

        k = pl.program_id(2)

        @pl.when(k == 0)
        def _():
            acc_ref[...] = jnp.zeros(acc_ref.shape, acc_ref.dtype)

        acc_ref[...] += jnp.dot(x_ref[...].astype(jnp.bfloat16),
                                w_ref[...].astype(jnp.bfloat16),
                                preferred_element_type=jnp.float32)

        if has_bias or not direct_out:
            @pl.when(k == pl.num_programs(2) - 1)
            def _():
                out = acc_ref[...]
                if b_ref is not None:
                    out = out + b_ref[...].astype(jnp.float32)
                o_ref[...] = out.astype(o_ref.dtype)

    return kernel


def linear(x, w, b=None, out_dtype=None):
    """x: (M, K), w: (K, N) [= torch weight.T], b: (N,) or None."""
    M, K = x.shape
    Kw, N = w.shape
    assert K == Kw, (x.shape, w.shape)
    out_dtype = np.dtype(out_dtype if out_dtype is not None else x.dtype)
    direct_out = out_dtype == np.dtype(jnp.float32)

    xb = np.dtype(x.dtype).itemsize
    wb = np.dtype(w.dtype).itemsize
    ob = out_dtype.itemsize
    tm, tk, tn = _select_linear_tiles(M, K, N, xb, wb, ob, needs_acc=not direct_out)

    grid = (M // tm, N // tn, K // tk)
    in_specs = [pl.BlockSpec((tm, tk), lambda i, j, k: (i, k)),
                pl.BlockSpec((tk, tn), lambda i, j, k: (k, j))]
    args = [x, w]
    if b is not None:
        in_specs.append(pl.BlockSpec((1, tn), lambda i, j, k: (0, j)))
        args.append(b.reshape(1, N))
    out_specs = pl.BlockSpec((tm, tn), lambda i, j, k: (i, j))
    scratch = [] if direct_out else [pltpu.VMEM((tm, tn), jnp.float32)]

    return pl.pallas_call(
        _make_matmul_kernel(b is not None, direct_out),
        out_shape=jax.ShapeDtypeStruct((M, N), out_dtype),
        grid_spec=pltpu.PrefetchScalarGridSpec(
            num_scalar_prefetch=0, grid=grid,
            in_specs=in_specs, out_specs=out_specs,
            scratch_shapes=scratch),
        compiler_params=pltpu.CompilerParams(
            dimension_semantics=("parallel", "parallel", "arbitrary"),
            vmem_limit_bytes=_VMEM_LIMIT_BYTES),
    )(*args)


# ---------------------------------------------------------------------------
# Flash-style online-softmax attention core (exp2 form, scale folded into q in-kernel).
# ---------------------------------------------------------------------------
def _make_flash_kernel(scale_log2e):
    def kernel(q_ref, k_ref, v_ref, o_ref, m_scr, l_scr, acc_scr):
        kv = pl.program_id(2)

        @pl.when(kv == 0)
        def _():
            m_scr[...] = jnp.full(m_scr.shape, -jnp.inf, m_scr.dtype)
            l_scr[...] = jnp.zeros(l_scr.shape, l_scr.dtype)
            acc_scr[...] = jnp.zeros(acc_scr.shape, acc_scr.dtype)

        # Scale (head_dim**-0.5 * log2(e)) applied to the small (tq, Dh) q tile; bf16 MXU operands.
        q = (q_ref[...] * scale_log2e).astype(jnp.bfloat16)        # (tq, Dh)
        k = k_ref[...].astype(jnp.bfloat16)                        # (tkv, Dh)
        v = v_ref[...].astype(jnp.bfloat16)                        # (tkv, Dh)

        # q @ k^T by contracting the head_dim axes -> no in-kernel transpose.
        s = jax.lax.dot_general(q, k, (((1,), (1,)), ((), ())),
                                preferred_element_type=jnp.float32)   # (tq, tkv), log2 units

        m_prev = m_scr[...]
        m_new = jnp.maximum(m_prev, jnp.max(s, axis=-1, keepdims=True))
        alpha = jnp.exp2(m_prev - m_new)
        p = jnp.exp2(s - m_new)

        l_scr[...] = alpha * l_scr[...] + jnp.sum(p, axis=-1, keepdims=True)
        acc_scr[...] = alpha * acc_scr[...] + jnp.dot(
            p.astype(jnp.bfloat16), v, preferred_element_type=jnp.float32)
        m_scr[...] = m_new

        @pl.when(kv == pl.num_programs(2) - 1)
        def _():
            inv_l = pl.reciprocal(l_scr[...], approx=False)
            o_ref[...] = (acc_scr[...] * inv_l).astype(o_ref.dtype)

    return kernel


def _multi_head_attention(qkv, num_heads, scale_log2e, out_dtype):
    """qkv: (B, N, 3*C), columns [q | k | v] head-major.  Returns (B*N, C) in out_dtype."""
    B, N, three_c = qkv.shape
    C = three_c // 3
    H = num_heads
    Dh = C // H

    qb = np.dtype(qkv.dtype).itemsize
    ob = np.dtype(out_dtype).itemsize
    tq, tkv = _select_attn_tiles(N, Dh, qb, ob)

    grid = (B * H, N // tq, N // tkv)          # single flattened (B, H) parallel axis
    kernel = _make_flash_kernel(scale_log2e)
    scratch = [
        pltpu.VMEM((tq, 1), jnp.float32),      # running max m
        pltpu.VMEM((tq, 1), jnp.float32),      # running sum l
        pltpu.VMEM((tq, Dh), jnp.float32),     # f32 output accumulator
    ]
    params = pltpu.CompilerParams(
        dimension_semantics=("parallel", "parallel", "arbitrary"),
        vmem_limit_bytes=_VMEM_LIMIT_BYTES)

    if Dh % 128 == 0:
        # Lane-dense fused-QKV fast path: read q/k/v head slices directly out of the (B, N, 3C)
        # activation and write attention output straight into its final (B, N, C) layout.
        q_spec = pl.BlockSpec((None, tq, Dh), lambda bh, qi, ki: (bh // H, qi, bh % H))
        k_spec = pl.BlockSpec((None, tkv, Dh), lambda bh, qi, ki: (bh // H, ki, H + bh % H))
        v_spec = pl.BlockSpec((None, tkv, Dh), lambda bh, qi, ki: (bh // H, ki, 2 * H + bh % H))
        o_spec = pl.BlockSpec((None, tq, Dh), lambda bh, qi, ki: (bh // H, qi, bh % H))
        out = pl.pallas_call(
            kernel,
            out_shape=jax.ShapeDtypeStruct((B, N, C), out_dtype),
            grid_spec=pltpu.PrefetchScalarGridSpec(
                num_scalar_prefetch=0, grid=grid,
                in_specs=[q_spec, k_spec, v_spec], out_specs=o_spec,
                scratch_shapes=scratch),
            compiler_params=params,
        )(qkv, qkv, qkv)
        return out.reshape(B * N, C)

    # General path (e.g. Dh = 64): one XLA transpose to head-major layout so the kernel blocks have
    # the full Dh as their last dim (legal for any Dh), then one transpose back for the output.
    # TODO(synk): fuse the head-split/merge layout change into the projection GEMMs.
    qkv_h = qkv.reshape(B, N, 3 * H, Dh).transpose(0, 2, 1, 3)     # (B, 3H, N, Dh)
    q_spec = pl.BlockSpec((None, None, tq, Dh),
                          lambda bh, qi, ki: (bh // H, bh % H, qi, 0))
    k_spec = pl.BlockSpec((None, None, tkv, Dh),
                          lambda bh, qi, ki: (bh // H, H + bh % H, ki, 0))
    v_spec = pl.BlockSpec((None, None, tkv, Dh),
                          lambda bh, qi, ki: (bh // H, 2 * H + bh % H, ki, 0))
    o_spec = pl.BlockSpec((None, None, tq, Dh),
                          lambda bh, qi, ki: (bh // H, bh % H, qi, 0))
    out = pl.pallas_call(
        kernel,
        out_shape=jax.ShapeDtypeStruct((B, H, N, Dh), out_dtype),
        grid_spec=pltpu.PrefetchScalarGridSpec(
            num_scalar_prefetch=0, grid=grid,
            in_specs=[q_spec, k_spec, v_spec], out_specs=o_spec,
            scratch_shapes=scratch),
        compiler_params=params,
    )(qkv_h, qkv_h, qkv_h)
    return out.transpose(0, 2, 1, 3).reshape(B * N, C)


# ---------------------------------------------------------------------------
# Full Attention.forward (default path: attn_mask=None, keep_rate=1.0, no dropout)
# ---------------------------------------------------------------------------
def attention_forward(x, w_qkv, w_proj, b_proj, b_qkv=None, *, num_heads,
                      qk_scale=None, intermediate_dtype=jnp.bfloat16):
    B, N, C = x.shape
    H = num_heads
    Dh = C // H
    scale = qk_scale if qk_scale is not None else Dh ** (-0.5)
    scale_log2e = float(scale) * _LOG2E      # exp2 form: softmax(exp2((s*scale)*log2e - m))

    # QKV projection; intermediate stored in bf16 to halve HBM traffic (f32 MXU accumulation).
    qkv = linear(x.reshape(B * N, C), w_qkv, b_qkv,
                 out_dtype=intermediate_dtype).reshape(B, N, 3 * C)

    attn_out = _multi_head_attention(qkv, H, scale_log2e, out_dtype=intermediate_dtype)

    # Output projection back to the input dtype (f32 path accumulates directly into o_ref).
    out = linear(attn_out, w_proj, b_proj, out_dtype=x.dtype).reshape(B, N, C)

    # attn_drop / proj_drop have rate 0.0 -> identity (elided at trace time).
    # keep_rate == default_keep_rate == 1.0 -> topk_idx is None.
    # TODO(synk): keep_rate < 1.0 top-k token pruning, attn_mask renormalization branch and
    # flag_extract_features feature dict are non-default paths and are not implemented here.
    topk_idx = None
    return out, topk_idx


# ---------------------------------------------------------------------------
# Pure-JAX reference (mirrors the PyTorch default path) + self-test
# ---------------------------------------------------------------------------
def _reference(x, w_qkv, w_proj, b_proj, b_qkv, num_heads):
    B, N, C = x.shape
    H = num_heads
    Dh = C // H
    scale = Dh ** (-0.5)
    qkv = x @ w_qkv
    if b_qkv is not None:
        qkv = qkv + b_qkv
    qkv = qkv.reshape(B, N, 3, H, Dh).transpose(2, 0, 3, 1, 4)
    q, k, v = qkv[0], qkv[1], qkv[2]
    attn = jnp.einsum("bhqd,bhkd->bhqk", q, k) * scale
    attn = jax.nn.softmax(attn, axis=-1)
    o = jnp.einsum("bhqk,bhkd->bhqd", attn, v)
    o = o.transpose(0, 2, 1, 3).reshape(B, N, C)
    return o @ w_proj + b_proj


def _run_case(key, B, N, C, H, qkv_bias):
    kx, kw1, kb1, kw2, kb2 = jax.random.split(key, 5)
    x = jax.random.normal(kx, (B, N, C), jnp.float32)
    w_qkv = jax.random.normal(kw1, (C, 3 * C), jnp.float32) / math.sqrt(C)
    b_qkv = 0.02 * jax.random.normal(kb1, (3 * C,), jnp.float32) if qkv_bias else None
    w_proj = jax.random.normal(kw2, (C, C), jnp.float32) / math.sqrt(C)
    b_proj = 0.02 * jax.random.normal(kb2, (C,), jnp.float32)

    out, topk_idx = attention_forward(x, w_qkv, w_proj, b_proj, b_qkv=b_qkv, num_heads=H)
    out = jax.block_until_ready(out)
    assert topk_idx is None

    ref = _reference(x, w_qkv, w_proj, b_proj, b_qkv, H)
    err = float(jnp.max(jnp.abs(out - ref)))
    denom = float(jnp.max(jnp.abs(ref))) + 1e-6
    assert err / denom < 2.5e-2, f"mismatch: max abs err {err} (rel {err / denom})"
    return out


if __name__ == "__main__":
    key = jax.random.PRNGKey(0)
    k1, k2 = jax.random.split(key)
    # head_dim = 128 -> lane-dense fused-QKV fast path (no head-split transposes).
    _run_case(k1, B=2, N=256, C=256, H=2, qkv_bias=False)
    # head_dim = 64  -> production-like head dim; general head-major path + bias GEMM variant.
    _run_case(k2, B=2, N=128, C=256, H=4, qkv_bias=True)
    print("KERNEL_OK")
</pallas_src>

<mosaic_0001>
module attributes {stable_mosaic.version = 11 : i64} {
  func.func @kernel(%arg0: i32, %arg1: i32, %arg2: i32, %arg3: memref<512x256xf32, #tpu.memory_space<vmem>>, %arg4: memref<256x768xf32, #tpu.memory_space<vmem>>, %arg5: memref<512x768xbf16, #tpu.memory_space<vmem>>, %arg6: memref<512x768xf32, #tpu.memory_space<vmem>>) attributes {dimension_semantics = [#tpu.dimension_semantics<parallel>, #tpu.dimension_semantics<parallel>, #tpu.dimension_semantics<arbitrary>], iteration_bounds = array<i64: 1, 1, 1>, scalar_prefetch = 0 : i64, scratch_operands = 1 : i64, tpu.core_type = #tpu.core_type<tc>, window_params = [{transform_indices = @transform_0, window_bounds = array<i64: 512, 256>}, {transform_indices = @transform_1, window_bounds = array<i64: 256, 768>}, {transform_indices = @transform_2, window_bounds = array<i64: 512, 768>}]} {
    %c0_i32 = arith.constant 0 : i32
    %0 = arith.cmpi eq, %arg2, %c0_i32 : i32
    %1 = arith.extui %0 : i1 to i32
    %c0_i32_0 = arith.constant 0 : i32
    %2 = arith.cmpi ne, %1, %c0_i32_0 : i32
    scf.if %2 {
      %cst_10 = arith.constant 0.000000e+00 : f32
      %14 = vector.broadcast %cst_10 : f32 to vector<512x768xf32>
      %c0_11 = arith.constant 0 : index
      %c0_12 = arith.constant 0 : index
      %15 = vector.load %arg6[%c0_11, %c0_12] : memref<512x768xf32, #tpu.memory_space<vmem>>, vector<512x768xf32>
      tpu.vector_store %arg6[%c0_11, %c0_12], %14 {strides = array<i32>} : memref<512x768xf32, #tpu.memory_space<vmem>>, vector<512x768xf32>,
    } else {
    }
    %c0 = arith.constant 0 : index
    %c0_1 = arith.constant 0 : index
    %3 = vector.load %arg6[%c0, %c0_1] : memref<512x768xf32, #tpu.memory_space<vmem>>, vector<512x768xf32>
    %c0_2 = arith.constant 0 : index
    %c0_3 = arith.constant 0 : index
    %4 = vector.load %arg3[%c0_2, %c0_3] : memref<512x256xf32, #tpu.memory_space<vmem>>, vector<512x256xf32>
    %5 = arith.truncf %4 : vector<512x256xf32> to vector<512x256xbf16>
    %c0_4 = arith.constant 0 : index
    %c0_5 = arith.constant 0 : index
    %6 = vector.load %arg4[%c0_4, %c0_5] : memref<256x768xf32, #tpu.memory_space<vmem>>, vector<256x768xf32>
    %7 = arith.truncf %6 : vector<256x768xf32> to vector<256x768xbf16>
    %cst = arith.constant dense<0.000000e+00> : vector<512x768xf32>
    %8 = tpu.matmul %5, %7, %cst {dimension_numbers = #tpu.dot_dimension_numbers<[1], [0], [0], [1], [0, 0, 1, 1], [], []>} : vector<512x256xbf16>, vector<256x768xbf16>, vector<512x768xf32> -> vector<512x768xf32>
    %9 = arith.addf %3, %8 : vector<512x768xf32>
    %c0_6 = arith.constant 0 : index
    %c0_7 = arith.constant 0 : index
    %10 = vector.load %arg6[%c0_6, %c0_7] : memref<512x768xf32, #tpu.memory_space<vmem>>, vector<512x768xf32>
    tpu.vector_store %arg6[%c0_6, %c0_7], %9 {strides = array<i32>} : memref<512x768xf32, #tpu.memory_space<vmem>>, vector<512x768xf32>,
    %c0_i32_8 = arith.constant 0 : i32
    %11 = arith.cmpi eq, %arg2, %c0_i32_8 : i32
    %12 = arith.extui %11 : i1 to i32
    %c0_i32_9 = arith.constant 0 : i32
    %13 = arith.cmpi ne, %12, %c0_i32_9 : i32
    scf.if %13 {
      %c0_10 = arith.constant 0 : index
      %c0_11 = arith.constant 0 : index
      %14 = vector.load %arg6[%c0_10, %c0_11] : memref<512x768xf32, #tpu.memory_space<vmem>>, vector<512x768xf32>
      %15 = arith.truncf %14 : vector<512x768xf32> to vector<512x768xbf16>
      %c0_12 = arith.constant 0 : index
      %c0_13 = arith.constant 0 : index
      %16 = vector.load %arg5[%c0_12, %c0_13] : memref<512x768xbf16, #tpu.memory_space<vmem>>, vector<512x768xbf16>
      tpu.vector_store %arg5[%c0_12, %c0_13], %15 {strides = array<i32>} : memref<512x768xbf16, #tpu.memory_space<vmem>>, vector<512x768xbf16>,
    } else {
    }
    return
  }
  func.func @transform_0(%arg0: i32, %arg1: i32, %arg2: i32) -> (i32, i32) {
    %c0_i32 = arith.constant 0 : i32
    return %arg0, %arg2 : i32, i32
  }
  func.func @transform_1(%arg0: i32, %arg1: i32, %arg2: i32) -> (i32, i32) {
    %c0_i32 = arith.constant 0 : i32
    return %arg2, %arg1 : i32, i32
  }
  func.func @transform_2(%arg0: i32, %arg1: i32, %arg2: i32) -> (i32, i32) {
    %c0_i32 = arith.constant 0 : i32
    return %arg0, %arg1 : i32, i32
  }
}

</mosaic_0001>

<bundles_post_ra>
// kernel: tpu_custom_call.1
= control target key start
LH: loop header
LB: loop body
LE: loop exit
PB: predicated region body
PF: predicated region fallthrough
CT: control target
= control target key end

     0   :  { %7 = vsyncpa [#allocation4], 0  ;;  %s5745_s0 = inlined_call_operand.hbm [shape: f32[512,256], index: 0, kind: input, shape index: {}]   ;;  %s5746_s1 = inlined_call_operand.hbm [shape: f32[256,768], index: 1, kind: input, shape index: {}]   ;;  %s5747_s2 = inlined_call_operand.hbm [shape: bf16[512,768], index: 2, kind: output, shape index: {}]  }
   0x1   :  { %8 = vsyncpa [#allocation7], 0 }
   0x2   :  { %9 = vsyncpa [#allocation5], 0  ;;  %s5365_s9 = smov [#allocation3]   ;;  %s5293_s13 = scalar_lea.hbm %s5745_s0, 16384 }
   0x3   :  { %s15_s10 = sshll.u32 %s5365_s9, 4  ;;  %p5294_p0 = scmp.ne.s32.totalorder %s5745_s0, %s5293_s13  ;;  %s16_s10 = int_to_ptr.vmem [resolvable:$true] %s15_s10 }
   0x4   :  { %p5297_p1 = scmp.lt.u32.totalorder %s5293_s13, %s5745_s0 }
   0x6   :  { %p5299_p2 = pnand %p5297_p1, %p5294_p0 }
   0x8   :  { %5302 = shalt.err (!%p5299_p2)
}
   0x9   :  { %s5303_s18 = scalar_lea.vmem %s16_s10, 16384  ;;  %p5308_p4 = scmp.lt.s32.totalorder %s16_s10, %s16_s10 }
   0xa   :  { %p5304_p3 = scmp.ne.s32.totalorder %s16_s10, %s5303_s18  ;;  %p5309_p5 = scmp.lt.s32.totalorder %s5303_s18, %s5303_s18 }
   0xc   :  { %p5310_p6 = por %p5309_p5, %p5308_p4 }
   0xe   :  { %p5311_p7 = pnand %p5310_p6, %p5304_p3 }
  0x10   :  { %5314 = shalt.err (!%p5311_p7)
}
  0x11   :  { %s5366_s19 = smov 256   ;;  %s5367_s20 = smov 16  }
  0x12   :  { %21 = dma.hbm_to_vmem [thread:$0]  %s5745_s0, 16384, %s16_s10, [#allocation4], %s5366_s19, %s5366_s19, %s5367_s20  }
  0x13   :  { %s5368_s23 = smov [#allocation6]   ;;  %s5315_s27 = scalar_lea.hbm %s5746_s1, 24576 }
  0x14   :  { %s27_s24 = sshll.u32 %s5368_s23, 4  ;;  %p5316_p8 = scmp.ne.s32.totalorder %s5746_s1, %s5315_s27  ;;  %s28_s24 = int_to_ptr.vmem [resolvable:$true] %s27_s24 }
  0x15   :  { %p5319_p9 = scmp.lt.u32.totalorder %s5315_s27, %s5746_s1 }
  0x17   :  { %p5321_p10 = pnand %p5319_p9, %p5316_p8 }
  0x19   :  { %5324 = shalt.err (!%p5321_p10)
}
  0x1a   :  { %s5325_s4 = scalar_lea.vmem %s28_s24, 24576  ;;  %p5330_p12 = scmp.lt.s32.totalorder %s28_s24, %s28_s24 }
  0x1b   :  { %p5326_p11 = scmp.ne.s32.totalorder %s28_s24, %s5325_s4  ;;  %p5331_p13 = scmp.lt.s32.totalorder %s5325_s4, %s5325_s4 }
  0x1d   :  { %p5332_p0 = por %p5331_p13, %p5330_p12 }
  0x1f   :  { %p5333_p1 = pnand %p5332_p0, %p5326_p11 }
  0x21   :  { %5336 = shalt.err (!%p5333_p1)
}
  0x22   :  { %s5369_s0 = smov 768   ;;  %s5370_s5 = smov 48  }
  0x23   :  { %33 = dma.hbm_to_vmem [thread:$0]  %s5746_s1, 24576, %s28_s24, [#allocation7], %s5369_s0, %s5369_s0, %s5370_s5  }
  0x24   :  { %5359 = dma.done.wait [#allocation4], 16384  }
  0x25   :  { %5360 = vsyncadd [#allocation4], 4294950912 }
  0x26   :  { %5361 = dma.done.wait [#allocation7], 24576  }
  0x27   :  { %5362 = vsyncadd [#allocation7], 4294942720  ;;  %v1005_v0 = vld [vmem:[#allocation6 + $0x8] sm:$0xff]  ;;  %v1011_v1 = vld [vmem:[#allocation6 + $0x38] sm:$0xff]  ;;  %s5371_s1 = smov [#allocation8]  }
  0x28   :  { %v1004_v2 = vld [vmem:[#allocation6] sm:$0xff]  ;;  %v1197_v3 = vpack.c.bf16 %v1011_v1, %v1005_v0  ;;  %v1010_v4 = vld [vmem:[#allocation6 + $0x30] sm:$0xff]  ;;  %v1017_v5 = vld [vmem:[#allocation6 + $0x68] sm:$0xff]  ;;  %s4855_s8 = sshll.u32 %s5371_s1, 4  ;;  %s4856_s8 = int_to_ptr.vmem [resolvable:$true] %s4855_s8 }
  0x29   :  { %v1023_v6 = vld [vmem:[#allocation6 + $0x98] sm:$0xff]  ;;  %v1196_v7 = vpack.c.bf16 %v1010_v4, %v1004_v2  ;;  %v1016_v9 = vld [vmem:[#allocation6 + $0x60] sm:$0xff]  ;;  %v1022_v10 = vld [vmem:[#allocation6 + $0x90] sm:$0xff]  ;;  %s5337_s9 = scalar_lea.vmem %s4856_s8, 24576  ;;  %p5342_p3 = scmp.lt.s32.totalorder %s4856_s8, %s4856_s8 }
  0x2a   :  { %v1203_v8 = vpack.c.bf16 %v1023_v6, %v1017_v5  ;;  %v1029_v11 = vld [vmem:[#allocation6 + $0xc8] sm:$0xff]  ;;  %1292 = vmatprep.subr.bf16.mxu0 %v1197_v3  ;;  %5252 = vmatprep.subr.bf16.mxu1 %v1197_v3  ;;  %v1035_v12 = vld [vmem:[#allocation6 + $0xf8] sm:$0xff]  ;;  %v1202_v13 = vpack.c.bf16 %v1022_v10, %v1016_v9  ;;  %v1028_v15 = vld [vmem:[#allocation6 + $0xc0] sm:$0xff]  ;;  %p5338_p2 = scmp.ne.s32.totalorder %s4856_s8, %s5337_s9  ;;  %p5343_p4 = scmp.lt.s32.totalorder %s5337_s9, %s5337_s9 }
  0x2b   :  { %1293 = vmatpush1.bf16.msra.mxu0 %v1196_v7  ;;  %5268 = vmatpush1.bf16.msra.mxu1 %v1196_v7  ;;  %v1209_v14 = vpack.c.bf16 %v1035_v12, %v1029_v11  ;;  %v1034_v16 = vld [vmem:[#allocation6 + $0xf0] sm:$0xff]  ;;  %v1041_v17 = vld [vmem:[#allocation6 + $0x128] sm:$0xff]  ;;  %v1047_v18 = vld [vmem:[#allocation6 + $0x158] sm:$0xff] }
  0x2c   :  { %1294 = vmatprep.subr.bf16.mxu0 %v1203_v8  ;;  %5253 = vmatprep.subr.bf16.mxu1 %v1203_v8  ;;  %v1208_v19 = vpack.c.bf16 %v1034_v16, %v1028_v15  ;;  %v1215_v20 = vpack.c.bf16 %v1047_v18, %v1041_v17  ;;  %v1040_v21 = vld [vmem:[#allocation6 + $0x120] sm:$0xff]  ;;  %v1046_v22 = vld [vmem:[#allocation6 + $0x150] sm:$0xff]  ;;  %v1053_v23 = vld [vmem:[#allocation6 + $0x188] sm:$0xff]  ;;  %p5344_p5 = por %p5343_p4, %p5342_p3 }
  0x2d   :  { %v1059_v24 = vld [vmem:[#allocation6 + $0x1b8] sm:$0xff]  ;;  %v1214_v25 = vpack.c.bf16 %v1046_v22, %v1040_v21  ;;  %v1052_v27 = vld [vmem:[#allocation6 + $0x180] sm:$0xff]  ;;  %v1058_v28 = vld [vmem:[#allocation6 + $0x1b0] sm:$0xff] }
  0x2e   :  { %v1221_v26 = vpack.c.bf16 %v1059_v24, %v1053_v23  ;;  %v1065_v29 = vld [vmem:[#allocation6 + $0x1e8] sm:$0xff]  ;;  %v1071_v30 = vld [vmem:[#allocation6 + $0x218] sm:$0xff]  ;;  %v1220_v31 = vpack.c.bf16 %v1058_v28, %v1052_v27  ;;  %v1064_v33 = vld [vmem:[#allocation6 + $0x1e0] sm:$0xff]  ;;  %p5345_p6 = pnand %p5344_p5, %p5338_p2 }
  0x2f   :  { %1295 = vmatpush1.bf16.msra.mxu0 %v1202_v13  ;;  %5269 = vmatpush1.bf16.msra.mxu1 %v1202_v13  ;;  %v1227_v32 = vpack.c.bf16 %v1071_v30, %v1065_v29  ;;  %v1070_v34 = vld [vmem:[#allocation6 + $0x210] sm:$0xff]  ;;  %v1077_v35 = vld [vmem:[#allocation6 + $0x248] sm:$0xff]  ;;  %v1083_v36 = vld [vmem:[#allocation6 + $0x278] sm:$0xff] }
  0x30   :  { %1296 = vmatprep.subr.bf16.mxu0 %v1209_v14  ;;  %5254 = vmatprep.subr.bf16.mxu1 %v1209_v14  ;;  %v1226_v37 = vpack.c.bf16 %v1070_v34, %v1064_v33  ;;  %v1076_v38 = vld [vmem:[#allocation6 + $0x240] sm:$0xff]  ;;  %v1082_v39 = vld [vmem:[#allocation6 + $0x270] sm:$0xff]  ;;  %v1233_v40 = vpack.c.bf16 %v1083_v36, %v1077_v35  ;;  %v1089_v41 = vld [vmem:[#allocation6 + $0x2a8] sm:$0xff] }
  0x31   :  { %v813_v42 = vld [vmem:[#allocation3 + $0x8] sm:$0xff]  ;;  %v815_v43 = vld [vmem:[#allocation3 + $0x18] sm:$0xff]  ;;  %v1232_v49 = vpack.c.bf16 %v1082_v39, %v1076_v38  ;;  %v1088_v51 = vld [vmem:[#allocation6 + $0x2a0] sm:$0xff] }
  0x32   :  { %v1095_v44 = vld [vmem:[#allocation6 + $0x2d8] sm:$0xff]  ;;  %v5413_v45 = vpack.c.bf16 %v815_v43, %v813_v42  ;;  %v877_v46 = vld [vmem:[#allocation3 + $0x208] sm:$0xff]  ;;  %v1094_v52 = vld [vmem:[#allocation6 + $0x2d0] sm:$0xff] }
  0x33   :  { %1297 = vmatpush1.bf16.msra.mxu0 %v1208_v19  ;;  %5270 = vmatpush1.bf16.msra.mxu1 %v1208_v19  ;;  %v879_v47 = vld [vmem:[#allocation3 + $0x218] sm:$0xff]  ;;  %v1239_v50 = vpack.c.bf16 %v1095_v44, %v1089_v41  ;;  %v1101_v53 = vld [vmem:[#allocation6 + $0x308] sm:$0xff]  ;;  %v1238_v55 = vpack.c.bf16 %v1094_v52, %v1088_v51  ;;  %v1100_v57 = vld [vmem:[#allocation6 + $0x300] sm:$0xff] }
  0x34   :  { %1298 = vmatprep.subr.bf16.mxu0 %v1215_v20  ;;  %5255 = vmatprep.subr.bf16.mxu1 %v1215_v20  ;;  %v5415_v48 = vpack.c.bf16 %v879_v47, %v877_v46  ;;  %v1107_v54 = vld [vmem:[#allocation6 + $0x338] sm:$0xff]  ;;  %v1106_v58 = vld [vmem:[#allocation6 + $0x330] sm:$0xff]  ;;  %v1113_v59 = vld [vmem:[#allocation6 + $0x368] sm:$0xff] }
  0x35   :  { %1324 = vmatprep.mubr.bf16.mxu0 %v5413_v45  ;;  %v1245_v56 = vpack.c.bf16 %v1107_v54, %v1101_v53  ;;  %v1119_v60 = vld [vmem:[#allocation6 + $0x398] sm:$0xff]  ;;  %v1244_v61 = vpack.c.bf16 %v1106_v58, %v1100_v57  ;;  %v1112_v63 = vld [vmem:[#allocation6 + $0x360] sm:$0xff]  ;;  %v1118_v0 = vld [vmem:[#allocation6 + $0x390] sm:$0xff] }
  0x36   :  { %1484 = vmatprep.mubr.bf16.mxu1 %v5415_v48  ;;  %v1251_v62 = vpack.c.bf16 %v1119_v60, %v1113_v59  ;;  %v1125_v1 = vld [vmem:[#allocation6 + $0x3c8] sm:$0xff]  ;;  %v1131_v2 = vld [vmem:[#allocation6 + $0x3f8] sm:$0xff]  ;;  %v1250_v3 = vpack.c.bf16 %v1118_v0, %v1112_v63  ;;  %v1124_v5 = vld [vmem:[#allocation6 + $0x3c0] sm:$0xff] }
  0x37   :  { %1299 = vmatpush1.bf16.msra.mxu0 %v1214_v25  ;;  %5271 = vmatpush1.bf16.msra.mxu1 %v1214_v25  ;;  %v1257_v4 = vpack.c.bf16 %v1131_v2, %v1125_v1  ;;  %v1130_v6 = vld [vmem:[#allocation6 + $0x3f0] sm:$0xff]  ;;  %v1137_v7 = vld [vmem:[#allocation6 + $0x428] sm:$0xff]  ;;  %v1143_v8 = vld [vmem:[#allocation6 + $0x458] sm:$0xff] }
  0x38   :  { %1300 = vmatprep.subr.bf16.mxu0 %v1221_v26  ;;  %5256 = vmatprep.subr.bf16.mxu1 %v1221_v26  ;;  %v1256_v9 = vpack.c.bf16 %v1130_v6, %v1124_v5  ;;  %v1263_v10 = vpack.c.bf16 %v1143_v8, %v1137_v7  ;;  %v1136_v11 = vld [vmem:[#allocation6 + $0x420] sm:$0xff]  ;;  %v1142_v12 = vld [vmem:[#allocation6 + $0x450] sm:$0xff]  ;;  %v1149_v13 = vld [vmem:[#allocation6 + $0x488] sm:$0xff] }
  0x39   :  { %v1155_v14 = vld [vmem:[#allocation6 + $0x4b8] sm:$0xff]  ;;  %v1262_v15 = vpack.c.bf16 %v1142_v12, %v1136_v11  ;;  %v1148_v17 = vld [vmem:[#allocation6 + $0x480] sm:$0xff]  ;;  %v1154_v18 = vld [vmem:[#allocation6 + $0x4b0] sm:$0xff] }
  0x3a   :  { %v1269_v16 = vpack.c.bf16 %v1155_v14, %v1149_v13  ;;  %v1161_v19 = vld [vmem:[#allocation6 + $0x4e8] sm:$0xff]  ;;  %v1167_v20 = vld [vmem:[#allocation6 + $0x518] sm:$0xff]  ;;  %v1268_v21 = vpack.c.bf16 %v1154_v18, %v1148_v17  ;;  %v1160_v23 = vld [vmem:[#allocation6 + $0x4e0] sm:$0xff] }
  0x3b   :  { %1301 = vmatpush1.bf16.msra.mxu0 %v1220_v31  ;;  %5272 = vmatpush1.bf16.msra.mxu1 %v1220_v31  ;;  %v1275_v22 = vpack.c.bf16 %v1167_v20, %v1161_v19  ;;  %v1166_v24 = vld [vmem:[#allocation6 + $0x510] sm:$0xff]  ;;  %v1173_v25 = vld [vmem:[#allocation6 + $0x548] sm:$0xff]  ;;  %v1179_v26 = vld [vmem:[#allocation6 + $0x578] sm:$0xff] }
  0x3c   :  { %1302 = vmatprep.subr.bf16.mxu0 %v1227_v32  ;;  %5257 = vmatprep.subr.bf16.mxu1 %v1227_v32  ;;  %v1274_v27 = vpack.c.bf16 %v1166_v24, %v1160_v23  ;;  %v1281_v28 = vpack.c.bf16 %v1179_v26, %v1173_v25  ;;  %v1172_v29 = vld [vmem:[#allocation6 + $0x540] sm:$0xff]  ;;  %v1178_v30 = vld [vmem:[#allocation6 + $0x570] sm:$0xff]  ;;  %v1185_v31 = vld [vmem:[#allocation6 + $0x5a8] sm:$0xff] }
  0x3d   :  { %v1191_v32 = vld [vmem:[#allocation6 + $0x5d8] sm:$0xff]  ;;  %v1280_v33 = vpack.c.bf16 %v1178_v30, %v1172_v29  ;;  %v1184_v35 = vld [vmem:[#allocation6 + $0x5a0] sm:$0xff]  ;;  %v1190_v36 = vld [vmem:[#allocation6 + $0x5d0] sm:$0xff] }
  0x3e   :  { %v1287_v34 = vpack.c.bf16 %v1191_v32, %v1185_v31  ;;  %v812_v38 = vld [vmem:[#allocation3] sm:$0xff]  ;;  %v1013_v39 = vld [vmem:[#allocation6 + $0x48] sm:$0xff]  ;;  %v1015_v41 = vld [vmem:[#allocation6 + $0x58] sm:$0xff]  ;;  %v1286_v46 = vpack.c.bf16 %v1190_v36, %v1184_v35 }
  0x3f   :  { %1303 = vmatpush1.bf16.msra.mxu0 %v1226_v37  ;;  %5273 = vmatpush1.bf16.msra.mxu1 %v1226_v37  ;;  %v1007_v37 = vld [vmem:[#allocation6 + $0x18] sm:$0xff]  ;;  %v814_v42 = vld [vmem:[#allocation3 + $0x10] sm:$0xff]  ;;  %v876_v43 = vld [vmem:[#allocation3 + $0x200] sm:$0xff] }
  0x40   :  { %1304 = vmatprep.subr.bf16.mxu0 %v1233_v40  ;;  %5258 = vmatprep.subr.bf16.mxu1 %v1233_v40  ;;  %v1009_v40 = vld [vmem:[#allocation6 + $0x28] sm:$0xff]  ;;  %v878_v44 = vld [vmem:[#allocation3 + $0x210] sm:$0xff]  ;;  %v1199_v51 = vpack.c.bf16 %v1013_v39, %v1007_v37  ;;  %v883_v57 = vld [vmem:[#allocation3 + $0x238] sm:$0xff]  ;;  %v5419_v59 = vpack.c.bf16 %v814_v42, %v812_v38 }
  0x41   :  { %v1006_v47 = vld [vmem:[#allocation6 + $0x10] sm:$0xff]  ;;  %v1201_v52 = vpack.c.bf16 %v1015_v41, %v1009_v40  ;;  %v817_v54 = vld [vmem:[#allocation3 + $0x28] sm:$0xff]  ;;  %v1019_v58 = vld [vmem:[#allocation6 + $0x78] sm:$0xff]  ;;  %v5421_v60 = vpack.c.bf16 %v878_v44, %v876_v43 }
  0x42   :  { %v1014_v53 = vld [vmem:[#allocation6 + $0x50] sm:$0xff]  ;;  %v1027_v63 = vld [vmem:[#allocation6 + $0xb8] sm:$0xff]  ;;  %v1020_v6 = vld [vmem:[#allocation6 + $0x80] sm:$0xff] }
  0x43   :  { %1305 = vmatpush1.bf16.msra.mxu0 %v1232_v49  ;;  %5274 = vmatpush1.bf16.msra.mxu1 %v1232_v49  ;;  %v1012_v49 = vld [vmem:[#allocation6 + $0x40] sm:$0xff]  ;;  %v1018_v2 = vld [vmem:[#allocation6 + $0x70] sm:$0xff]  ;;  %v1031_v8 = vld [vmem:[#allocation6 + $0xd8] sm:$0xff] }
  0x44   :  { %1306 = vmatprep.subr.bf16.mxu0 %v1239_v50  ;;  %5259 = vmatprep.subr.bf16.mxu1 %v1239_v50  ;;  %v1008_v50 = vld [vmem:[#allocation6 + $0x20] sm:$0xff]  ;;  %v1198_v0 = vpack.c.bf16 %v1012_v49, %v1006_v47  ;;  %v1026_v7 = vld [vmem:[#allocation6 + $0xb0] sm:$0xff]  ;;  %v1037_v12 = vld [vmem:[#allocation6 + $0x108] sm:$0xff] }
  0x45   :  { %v1200_v1 = vpack.c.bf16 %v1014_v53, %v1008_v50  ;;  %v1033_v13 = vld [vmem:[#allocation6 + $0xe8] sm:$0xff]  ;;  %v1039_v14 = vld [vmem:[#allocation6 + $0x118] sm:$0xff]  ;;  %v882_v17 = vld [vmem:[#allocation3 + $0x230] sm:$0xff]  ;;  %v1206_v19 = vpack.c.bf16 %v1026_v7, %v1020_v6  ;;  %v1211_v24 = vpack.c.bf16 %v1037_v12, %v1031_v8 }
  0x46   :  { %v821_v20 = vld [vmem:[#allocation3 + $0x48] sm:$0xff]  ;;  %v887_v23 = vld [vmem:[#allocation3 + $0x258] sm:$0xff]  ;;  %v1213_v25 = vpack.c.bf16 %v1039_v14, %v1033_v13  ;;  %v1030_v26 = vld [vmem:[#allocation6 + $0xd0] sm:$0xff] }
  0x47   :  { %1307 = vmatpush1.bf16.msra.mxu0 %v1238_v55  ;;  %5275 = vmatpush1.bf16.msra.mxu1 %v1238_v55  ;;  %v819_v55 = vld [vmem:[#allocation3 + $0x38] sm:$0xff]  ;;  %v1038_v29 = vld [vmem:[#allocation6 + $0x110] sm:$0xff]  ;;  %v1048_v41 = vld [vmem:[#allocation6 + $0x160] sm:$0xff] }
  0x48   :  { %1308 = vmatprep.subr.bf16.mxu0 %v1245_v56  ;;  %5260 = vmatprep.subr.bf16.mxu1 %v1245_v56  ;;  %v881_v56 = vld [vmem:[#allocation3 + $0x228] sm:$0xff]  ;;  %v1043_v30 = vld [vmem:[#allocation6 + $0x138] sm:$0xff]  ;;  %v1042_v40 = vld [vmem:[#allocation6 + $0x130] sm:$0xff] }
  0x49   :  { %v5425_v5 = vpack.c.bf16 %v883_v57, %v881_v56  ;;  %v1051_v35 = vld [vmem:[#allocation6 + $0x178] sm:$0xff]  ;;  %v820_v42 = vld [vmem:[#allocation3 + $0x40] sm:$0xff]  ;;  %v822_v43 = vld [vmem:[#allocation3 + $0x50] sm:$0xff] }
  0x4a   :  { %v884_v44 = vld [vmem:[#allocation3 + $0x240] sm:$0xff]  ;;  %v1061_v53 = vld [vmem:[#allocation6 + $0x1c8] sm:$0xff]  ;;  %v827_v57 = vld [vmem:[#allocation3 + $0x78] sm:$0xff] }
  0x4b   :  { %1309 = vmatpush1.bf16.msra.mxu0 %v1244_v61  ;;  %5276 = vmatpush1.bf16.msra.mxu1 %v1244_v61  ;;  %v1025_v61 = vld [vmem:[#allocation6 + $0xa8] sm:$0xff]  ;;  %v1044_v50 = vld [vmem:[#allocation6 + $0x140] sm:$0xff]  ;;  %v1062_v7 = vld [vmem:[#allocation6 + $0x1d0] sm:$0xff] }
  0x4c   :  { %1310 = vmatprep.subr.bf16.mxu0 %v1251_v62  ;;  %5261 = vmatprep.subr.bf16.mxu1 %v1251_v62  ;;  %v1021_v62 = vld [vmem:[#allocation6 + $0x88] sm:$0xff]  ;;  %v1056_v6 = vld [vmem:[#allocation6 + $0x1a0] sm:$0xff]  ;;  %v1067_v8 = vld [vmem:[#allocation6 + $0x1f8] sm:$0xff] }
  0x4d   :  { %v1207_v11 = vpack.c.bf16 %v1027_v63, %v1021_v62  ;;  %v825_v56 = vld [vmem:[#allocation3 + $0x68] sm:$0xff]  ;;  %v1216_v62 = vpack.c.bf16 %v1048_v41, %v1042_v40  ;;  %v1075_v13 = vld [vmem:[#allocation6 + $0x238] sm:$0xff] }
  0x4e   :  { %v1069_v12 = vld [vmem:[#allocation6 + $0x208] sm:$0xff]  ;;  %v5447_v14 = vpack.c.bf16 %v827_v57, %v825_v56 }
  0x4f   :  { %1311 = vmatpush1.bf16.msra.mxu0 %v1250_v3  ;;  %5277 = vmatpush1.bf16.msra.mxu1 %v1250_v3  ;;  %v1024_v3 = vld [vmem:[#allocation6 + $0xa0] sm:$0xff] }
  0x50   :  { %1312 = vmatprep.subr.bf16.mxu0 %v1257_v4  ;;  %5262 = vmatprep.subr.bf16.mxu1 %v1257_v4  ;;  %v5423_v4 = vpack.c.bf16 %v819_v55, %v817_v54  ;;  %v1204_v18 = vpack.c.bf16 %v1024_v3, %v1018_v2  ;;  %v1057_v54 = vld [vmem:[#allocation6 + $0x1a8] sm:$0xff]  ;;  %v1063_v55 = vld [vmem:[#allocation6 + $0x1d8] sm:$0xff] }
  0x51   :  { %v1225_v3 = vpack.c.bf16 %v1063_v55, %v1057_v54  ;;  %v1093_v54 = vld [vmem:[#allocation6 + $0x2c8] sm:$0xff]  ;;  %v1099_v55 = vld [vmem:[#allocation6 + $0x2f8] sm:$0xff] }
  0x53   :  { %1313 = vmatpush1.bf16.msra.mxu0 %v1256_v9  ;;  %5278 = vmatpush1.bf16.msra.mxu1 %v1256_v9  ;;  %v816_v9 = vld [vmem:[#allocation3 + $0x20] sm:$0xff] }
  0x54   :  { %1314 = vmatprep.subr.bf16.mxu0 %v1263_v10  ;;  %5263 = vmatprep.subr.bf16.mxu1 %v1263_v10  ;;  %v1205_v10 = vpack.c.bf16 %v1025_v61, %v1019_v58  ;;  %v889_v58 = vld [vmem:[#allocation3 + $0x268] sm:$0xff]  ;;  %v891_v61 = vld [vmem:[#allocation3 + $0x278] sm:$0xff] }
  0x57   :  { %1315 = vmatpush1.bf16.msra.mxu0 %v1262_v15  ;;  %5279 = vmatpush1.bf16.msra.mxu1 %v1262_v15  ;;  %v818_v15 = vld [vmem:[#allocation3 + $0x30] sm:$0xff] }
  0x58   :  { %1316 = vmatprep.subr.bf16.mxu0 %v1269_v16  ;;  %5264 = vmatprep.subr.bf16.mxu1 %v1269_v16  ;;  %v880_v16 = vld [vmem:[#allocation3 + $0x220] sm:$0xff]  ;;  %v5431_v31 = vpack.c.bf16 %v818_v15, %v816_v9  ;;  %v5443_v9 = vpack.c.bf16 %v822_v43, %v820_v42  ;;  %v5449_v15 = vpack.c.bf16 %v891_v61, %v889_v58  ;;  %v1078_v42 = vld [vmem:[#allocation6 + $0x250] sm:$0xff] }
  0x59   :  { %v5433_v32 = vpack.c.bf16 %v882_v17, %v880_v16  ;;  %v1224_v17 = vpack.c.bf16 %v1062_v7, %v1056_v6  ;;  %v1084_v43 = vld [vmem:[#allocation6 + $0x280] sm:$0xff]  ;;  %v1243_v7 = vpack.c.bf16 %v1099_v55, %v1093_v54 }
  0x5a   :  { %v1234_v58 = vpack.c.bf16 %v1084_v43, %v1078_v42 }
  0x5b   :  { %1317 = vmatpush1.bf16.msra.mxu0 %v1268_v21  ;;  %5280 = vmatpush1.bf16.msra.mxu1 %v1268_v21  ;;  %v823_v21 = vld [vmem:[#allocation3 + $0x58] sm:$0xff] }
  0x5c   :  { %1318 = vmatprep.subr.bf16.mxu0 %v1275_v22  ;;  %5265 = vmatprep.subr.bf16.mxu1 %v1275_v22  ;;  %v885_v22 = vld [vmem:[#allocation3 + $0x248] sm:$0xff]  ;;  %v5435_v36 = vpack.c.bf16 %v823_v21, %v821_v20  ;;  %v824_v20 = vld [vmem:[#allocation3 + $0x60] sm:$0xff]  ;;  %v826_v21 = vld [vmem:[#allocation3 + $0x70] sm:$0xff] }
  0x5d   :  { %v5437_v37 = vpack.c.bf16 %v887_v23, %v885_v22  ;;  %v888_v22 = vld [vmem:[#allocation3 + $0x260] sm:$0xff]  ;;  %v890_v23 = vld [vmem:[#allocation3 + $0x270] sm:$0xff] }
  0x5f   :  { %1319 = vmatpush1.bf16.msra.mxu0 %v1274_v27  ;;  %5281 = vmatpush1.bf16.msra.mxu1 %v1274_v27  ;;  %v1036_v27 = vld [vmem:[#allocation6 + $0x100] sm:$0xff] }
  0x60   :  { %1320 = vmatprep.subr.bf16.mxu0 %v1281_v28  ;;  %5266 = vmatprep.subr.bf16.mxu1 %v1281_v28  ;;  %v1032_v28 = vld [vmem:[#allocation6 + $0xe0] sm:$0xff]  ;;  %v1210_v38 = vpack.c.bf16 %v1036_v27, %v1030_v26  ;;  %v1074_v27 = vld [vmem:[#allocation6 + $0x230] sm:$0xff] }
  0x61   :  { %v1212_v39 = vpack.c.bf16 %v1038_v29, %v1032_v28  ;;  %v1068_v26 = vld [vmem:[#allocation6 + $0x200] sm:$0xff]  ;;  %v1079_v28 = vld [vmem:[#allocation6 + $0x258] sm:$0xff]  ;;  %v1085_v29 = vld [vmem:[#allocation6 + $0x288] sm:$0xff] }
  0x62   :  { %v1230_v41 = vpack.c.bf16 %v1074_v27, %v1068_v26 }
  0x63   :  { %1321 = vmatpush1.bf16.msra.mxu0 %v1280_v33  ;;  %5282 = vmatpush1.bf16.msra.mxu1 %v1280_v33  ;;  %v1049_v33 = vld [vmem:[#allocation6 + $0x168] sm:$0xff] }
  0x64   :  { %1322 = vmatprep.subr.bf16.mxu0 %v1287_v34  ;;  %5267 = vmatprep.subr.bf16.mxu1 %v1287_v34  ;;  %v1045_v34 = vld [vmem:[#allocation6 + $0x148] sm:$0xff]  ;;  %v1217_v47 = vpack.c.bf16 %v1049_v33, %v1043_v30  ;;  %v1087_v33 = vld [vmem:[#allocation6 + $0x298] sm:$0xff] }
  0x65   :  { %v1219_v49 = vpack.c.bf16 %v1051_v35, %v1045_v34  ;;  %v1081_v30 = vld [vmem:[#allocation6 + $0x268] sm:$0xff]  ;;  %v831_v35 = vld [vmem:[#allocation3 + $0x98] sm:$0xff] }
  0x66   :  { %v829_v34 = vld [vmem:[#allocation3 + $0x88] sm:$0xff] }
  0x67   :  { %1323 = vmatpush1.bf16.msra.mxu0 %v1286_v46  ;;  %5283 = vmatpush1.bf16.msra.mxu1 %v1286_v46  ;;  %v886_v46 = vld [vmem:[#allocation3 + $0x250] sm:$0xff]  ;;  %v5459_v56 = vpack.c.bf16 %v831_v35, %v829_v34  ;;  %v1121_v35 = vld [vmem:[#allocation6 + $0x3a8] sm:$0xff] }
  0x68   :  { %1645 = vmatprep.subr.bf16.mxu1 %v1199_v51  ;;  %1998 = vmatprep.subr.bf16.mxu0 %v1201_v52  ;;  %v1050_v51 = vld [vmem:[#allocation6 + $0x170] sm:$0xff]  ;;  %v1055_v52 = vld [vmem:[#allocation6 + $0x198] sm:$0xff] }
  0x69   :  { %v1218_v63 = vpack.c.bf16 %v1050_v51, %v1044_v50  ;;  %v1223_v2 = vpack.c.bf16 %v1061_v53, %v1055_v52  ;;  %v1091_v50 = vld [vmem:[#allocation6 + $0x2b8] sm:$0xff]  ;;  %v5455_v51 = vpack.c.bf16 %v826_v21, %v824_v20  ;;  %v5457_v52 = vpack.c.bf16 %v890_v23, %v888_v22  ;;  %v1097_v53 = vld [vmem:[#allocation6 + $0x2e8] sm:$0xff] }
  0x6a   :  { %1325 = vmatmul.mubr.bf16.vlgmr.msra.gmra.mrb[0].mxu0 %v5419_v59  ;;  %1485 = vmatmul.mubr.bf16.vlgmr.msra.gmra.mrb[0].mxu1 %v5421_v60  ;;  %v1241_v6 = vpack.c.bf16 %v1097_v53, %v1091_v50  ;;  %v897_v20 = vld [vmem:[#allocation3 + $0x2a8] sm:$0xff]  ;;  %v899_v21 = vld [vmem:[#allocation3 + $0x2b8] sm:$0xff]  ;;  %v896_v50 = vld [vmem:[#allocation3 + $0x2a0] sm:$0xff] }
  0x6b   :  { %1646 = vmatpush1.bf16.msra.mxu1 %v1198_v0  ;;  %1999 = vmatpush1.bf16.msra.mxu0 %v1200_v1  ;;  %v1054_v0 = vld [vmem:[#allocation6 + $0x190] sm:$0xff]  ;;  %v1060_v1 = vld [vmem:[#allocation6 + $0x1c0] sm:$0xff] }
  0x6c   :  { %1334 = vmatprep.mubr.bf16.mxu0 %v5423_v4  ;;  %1494 = vmatprep.mubr.bf16.mxu1 %v5425_v5  ;;  %v1222_v16 = vpack.c.bf16 %v1060_v1, %v1054_v0  ;;  %v828_v0 = vld [vmem:[#allocation3 + $0x80] sm:$0xff]  ;;  %v830_v1 = vld [vmem:[#allocation3 + $0x90] sm:$0xff] }
  0x6d   :  { %1647 = vmatprep.subr.bf16.mxu1 %v1205_v10  ;;  %2000 = vmatprep.subr.bf16.mxu0 %v1207_v11  ;;  %v5445_v10 = vpack.c.bf16 %v886_v46, %v884_v44  ;;  %v1073_v11 = vld [vmem:[#allocation6 + $0x228] sm:$0xff]  ;;  %v1235_v44 = vpack.c.bf16 %v1085_v29, %v1079_v28  ;;  %v1237_v46 = vpack.c.bf16 %v1087_v33, %v1081_v30  ;;  %v1104_v28 = vld [vmem:[#allocation6 + $0x320] sm:$0xff]  ;;  %v1110_v29 = vld [vmem:[#allocation6 + $0x350] sm:$0xff] }
  0x6e   :  { %v1115_v30 = vld [vmem:[#allocation6 + $0x378] sm:$0xff]  ;;  %v5467_v33 = vpack.c.bf16 %v830_v1, %v828_v0  ;;  %v1248_v43 = vpack.c.bf16 %v1110_v29, %v1104_v28  ;;  %v898_v53 = vld [vmem:[#allocation3 + $0x2b0] sm:$0xff]  ;;  %v1129_v0 = vld [vmem:[#allocation6 + $0x3e8] sm:$0xff] }
  0x6f   :  { %1648 = vmatpush1.bf16.msra.mxu1 %v1204_v18  ;;  %2001 = vmatpush1.bf16.msra.mxu0 %v1206_v19  ;;  %v1066_v18 = vld [vmem:[#allocation6 + $0x1f0] sm:$0xff]  ;;  %v1072_v19 = vld [vmem:[#allocation6 + $0x220] sm:$0xff]  ;;  %v1253_v54 = vpack.c.bf16 %v1121_v35, %v1115_v30  ;;  %v1135_v1 = vld [vmem:[#allocation6 + $0x418] sm:$0xff] }
  0x70   :  { %1649 = vmatprep.subr.bf16.mxu1 %v1211_v24  ;;  %2002 = vmatprep.subr.bf16.mxu0 %v1213_v25  ;;  %v1229_v24 = vpack.c.bf16 %v1073_v11, %v1067_v8  ;;  %v1231_v25 = vpack.c.bf16 %v1075_v13, %v1069_v12  ;;  %v1228_v40 = vpack.c.bf16 %v1072_v19, %v1066_v18  ;;  %v1092_v8 = vld [vmem:[#allocation6 + $0x2c0] sm:$0xff]  ;;  %v1098_v11 = vld [vmem:[#allocation6 + $0x2f0] sm:$0xff]  ;;  %v1103_v12 = vld [vmem:[#allocation6 + $0x318] sm:$0xff] }
  0x71   :  { %v1109_v13 = vld [vmem:[#allocation6 + $0x348] sm:$0xff]  ;;  %v835_v19 = vld [vmem:[#allocation3 + $0xb8] sm:$0xff]  ;;  %v1242_v23 = vpack.c.bf16 %v1098_v11, %v1092_v8  ;;  %v1138_v30 = vld [vmem:[#allocation6 + $0x430] sm:$0xff] }
  0x72   :  { %1335 = vmatmul.mubr.bf16.gmra.mrb[4].mxu0 %v5431_v31  ;;  %1495 = vmatmul.mubr.bf16.gmra.mrb[4].mxu1 %v5433_v32  ;;  %v833_v18 = vld [vmem:[#allocation3 + $0xa8] sm:$0xff]  ;;  %v1247_v26 = vpack.c.bf16 %v1109_v13, %v1103_v12  ;;  %v1126_v12 = vld [vmem:[#allocation6 + $0x3d0] sm:$0xff]  ;;  %v1132_v13 = vld [vmem:[#allocation6 + $0x400] sm:$0xff] }
  0x73   :  { %1344 = vmatprep.mubr.bf16.mxu0 %v5435_v36  ;;  %1504 = vmatprep.mubr.bf16.mxu1 %v5437_v37  ;;  %v1258_v28 = vpack.c.bf16 %v1132_v13, %v1126_v12  ;;  %v1144_v35 = vld [vmem:[#allocation6 + $0x460] sm:$0xff]  ;;  %v1163_v12 = vld [vmem:[#allocation6 + $0x4f8] sm:$0xff] }
  0x74   :  { %1650 = vmatpush1.bf16.msra.mxu1 %v1210_v38  ;;  %2003 = vmatpush1.bf16.msra.mxu0 %v1212_v39  ;;  %v893_v38 = vld [vmem:[#allocation3 + $0x288] sm:$0xff]  ;;  %v895_v39 = vld [vmem:[#allocation3 + $0x298] sm:$0xff] }
  0x75   :  { %1651 = vmatprep.subr.bf16.mxu1 %v1217_v47  ;;  %2004 = vmatprep.subr.bf16.mxu0 %v1219_v49  ;;  %v1080_v47 = vld [vmem:[#allocation6 + $0x260] sm:$0xff]  ;;  %v1086_v49 = vld [vmem:[#allocation6 + $0x290] sm:$0xff]  ;;  %v5461_v57 = vpack.c.bf16 %v895_v39, %v893_v38  ;;  %v1117_v38 = vld [vmem:[#allocation6 + $0x388] sm:$0xff] }
  0x76   :  { %v1236_v61 = vpack.c.bf16 %v1086_v49, %v1080_v47  ;;  %v1123_v39 = vld [vmem:[#allocation6 + $0x3b8] sm:$0xff]  ;;  %v832_v47 = vld [vmem:[#allocation3 + $0xa0] sm:$0xff]  ;;  %v834_v49 = vld [vmem:[#allocation3 + $0xb0] sm:$0xff] }
  0x77   :  { %v1255_v55 = vpack.c.bf16 %v1123_v39, %v1117_v38  ;;  %v836_v38 = vld [vmem:[#allocation3 + $0xc0] sm:$0xff]  ;;  %v838_v39 = vld [vmem:[#allocation3 + $0xd0] sm:$0xff] }
  0x78   :  { %1652 = vmatpush1.bf16.msra.mxu1 %v1216_v62  ;;  %2005 = vmatpush1.bf16.msra.mxu0 %v1218_v63  ;;  %v1090_v62 = vld [vmem:[#allocation6 + $0x2b0] sm:$0xff]  ;;  %v1096_v63 = vld [vmem:[#allocation6 + $0x2e0] sm:$0xff]  ;;  %v5491_v13 = vpack.c.bf16 %v838_v39, %v836_v38 }
  0x79   :  { %1653 = vmatprep.subr.bf16.mxu1 %v1223_v2  ;;  %2006 = vmatprep.subr.bf16.mxu0 %v1225_v3  ;;  %v892_v2 = vld [vmem:[#allocation3 + $0x280] sm:$0xff]  ;;  %v894_v3 = vld [vmem:[#allocation3 + $0x290] sm:$0xff]  ;;  %v1240_v22 = vpack.c.bf16 %v1096_v63, %v1090_v62  ;;  %v1127_v62 = vld [vmem:[#allocation6 + $0x3d8] sm:$0xff] }
  0x7a   :  { %1345 = vmatmul.mubr.bf16.gmra.mrb[8].mxu0 %v5443_v9  ;;  %1505 = vmatmul.mubr.bf16.gmra.mrb[8].mxu1 %v5445_v10  ;;  %v5469_v34 = vpack.c.bf16 %v894_v3, %v892_v2  ;;  %v1133_v63 = vld [vmem:[#allocation6 + $0x408] sm:$0xff]  ;;  %v839_v3 = vld [vmem:[#allocation3 + $0xd8] sm:$0xff]  ;;  %v906_v38 = vld [vmem:[#allocation3 + $0x2f0] sm:$0xff] }
  0x7b   :  { %1354 = vmatprep.mubr.bf16.mxu0 %v5447_v14  ;;  %1514 = vmatprep.mubr.bf16.mxu1 %v5449_v15  ;;  %v837_v2 = vld [vmem:[#allocation3 + $0xc8] sm:$0xff] }
  0x7c   :  { %1654 = vmatpush1.bf16.msra.mxu1 %v1222_v16  ;;  %2007 = vmatpush1.bf16.msra.mxu0 %v1224_v17  ;;  %v1105_v16 = vld [vmem:[#allocation6 + $0x328] sm:$0xff]  ;;  %v1111_v17 = vld [vmem:[#allocation6 + $0x358] sm:$0xff] }
  0x7d   :  { %1655 = vmatprep.subr.bf16.mxu1 %v1229_v24  ;;  %2008 = vmatprep.subr.bf16.mxu0 %v1231_v25  ;;  %v1102_v24 = vld [vmem:[#allocation6 + $0x310] sm:$0xff]  ;;  %v1108_v25 = vld [vmem:[#allocation6 + $0x340] sm:$0xff]  ;;  %v1249_v27 = vpack.c.bf16 %v1111_v17, %v1105_v16  ;;  %v1259_v16 = vpack.c.bf16 %v1133_v63, %v1127_v62  ;;  %v1261_v17 = vpack.c.bf16 %v1135_v1, %v1129_v0  ;;  %v905_v62 = vld [vmem:[#allocation3 + $0x2e8] sm:$0xff] }
  0x7e   :  { %v1246_v42 = vpack.c.bf16 %v1108_v25, %v1102_v24  ;;  %v1141_v24 = vld [vmem:[#allocation6 + $0x448] sm:$0xff]  ;;  %v1147_v25 = vld [vmem:[#allocation6 + $0x478] sm:$0xff]  ;;  %v1264_v0 = vpack.c.bf16 %v1144_v35, %v1138_v30  ;;  %v840_v30 = vld [vmem:[#allocation3 + $0xe0] sm:$0xff] }
  0x7f   :  { %v907_v63 = vld [vmem:[#allocation3 + $0x2f8] sm:$0xff]  ;;  %v842_v35 = vld [vmem:[#allocation3 + $0xf0] sm:$0xff] }
  0x80   :  { %1656 = vmatpush1.bf16.msra.mxu1 %v1228_v40  ;;  %2009 = vmatpush1.bf16.msra.mxu0 %v1230_v41  ;;  %v5471_v40 = vpack.c.bf16 %v835_v19, %v833_v18  ;;  %v5473_v41 = vpack.c.bf16 %v899_v21, %v897_v20  ;;  %v1128_v18 = vld [vmem:[#allocation6 + $0x3e0] sm:$0xff]  ;;  %v1134_v19 = vld [vmem:[#allocation6 + $0x410] sm:$0xff]  ;;  %v1139_v20 = vld [vmem:[#allocation6 + $0x438] sm:$0xff]  ;;  %v5479_v21 = vpack.c.bf16 %v834_v49, %v832_v47 }
  0x81   :  { %1657 = vmatprep.subr.bf16.mxu1 %v1235_v44  ;;  %2010 = vmatprep.subr.bf16.mxu0 %v1237_v46  ;;  %v1114_v44 = vld [vmem:[#allocation6 + $0x370] sm:$0xff]  ;;  %v1120_v46 = vld [vmem:[#allocation6 + $0x3a0] sm:$0xff]  ;;  %v1260_v29 = vpack.c.bf16 %v1134_v19, %v1128_v18  ;;  %v1165_v18 = vld [vmem:[#allocation6 + $0x508] sm:$0xff] }
  0x82   :  { %1355 = vmatmul.mubr.bf16.gmra.mrb[12].mxu0 %v5455_v51  ;;  %1515 = vmatmul.mubr.bf16.gmra.mrb[12].mxu1 %v5457_v52  ;;  %v1252_v8 = vpack.c.bf16 %v1120_v46, %v1114_v44  ;;  %v1267_v46 = vpack.c.bf16 %v1147_v25, %v1141_v24  ;;  %v1140_v47 = vld [vmem:[#allocation6 + $0x440] sm:$0xff]  ;;  %v1146_v49 = vld [vmem:[#allocation6 + $0x470] sm:$0xff]  ;;  %v1171_v19 = vld [vmem:[#allocation6 + $0x538] sm:$0xff] }
  0x83   :  { %1364 = vmatprep.mubr.bf16.mxu0 %v5459_v56  ;;  %1524 = vmatprep.mubr.bf16.mxu1 %v5461_v57  ;;  %v1266_v1 = vpack.c.bf16 %v1146_v49, %v1140_v47  ;;  %v1175_v47 = vld [vmem:[#allocation6 + $0x558] sm:$0xff]  ;;  %v1181_v49 = vld [vmem:[#allocation6 + $0x588] sm:$0xff] }
  0x84   :  { %1658 = vmatpush1.bf16.msra.mxu1 %v1234_v58  ;;  %2011 = vmatpush1.bf16.msra.mxu0 %v1236_v61  ;;  %v1116_v58 = vld [vmem:[#allocation6 + $0x380] sm:$0xff]  ;;  %v1122_v61 = vld [vmem:[#allocation6 + $0x3b0] sm:$0xff] }
  0x85   :  { %1659 = vmatprep.subr.bf16.mxu1 %v1241_v6  ;;  %2012 = vmatprep.subr.bf16.mxu0 %v1243_v7  ;;  %v901_v6 = vld [vmem:[#allocation3 + $0x2c8] sm:$0xff]  ;;  %v903_v7 = vld [vmem:[#allocation3 + $0x2d8] sm:$0xff]  ;;  %v1254_v11 = vpack.c.bf16 %v1122_v61, %v1116_v58 }
  0x86   :  { %v841_v58 = vld [vmem:[#allocation3 + $0xe8] sm:$0xff]  ;;  %v843_v61 = vld [vmem:[#allocation3 + $0xf8] sm:$0xff] }
  0x88   :  { %1660 = vmatpush1.bf16.msra.mxu1 %v1240_v22  ;;  %2013 = vmatpush1.bf16.msra.mxu0 %v1242_v23  ;;  %v5481_v22 = vpack.c.bf16 %v898_v53, %v896_v50  ;;  %v1145_v23 = vld [vmem:[#allocation6 + $0x468] sm:$0xff]  ;;  %v1151_v50 = vld [vmem:[#allocation6 + $0x498] sm:$0xff] }
  0x89   :  { %1661 = vmatprep.subr.bf16.mxu1 %v1247_v26  ;;  %2014 = vmatprep.subr.bf16.mxu0 %v1249_v27  ;;  %v5483_v26 = vpack.c.bf16 %v839_v3, %v837_v2  ;;  %v5485_v27 = vpack.c.bf16 %v903_v7, %v901_v6  ;;  %v1265_v44 = vpack.c.bf16 %v1145_v23, %v1139_v20  ;;  %v1157_v53 = vld [vmem:[#allocation6 + $0x4c8] sm:$0xff]  ;;  %v1150_v2 = vld [vmem:[#allocation6 + $0x490] sm:$0xff]  ;;  %v1156_v3 = vld [vmem:[#allocation6 + $0x4c0] sm:$0xff] }
  0x8a   :  { %1365 = vmatmul.mubr.bf16.gmra.mrb[16].mxu0 %v5467_v33  ;;  %1525 = vmatmul.mubr.bf16.gmra.mrb[16].mxu1 %v5469_v34  ;;  %v1271_v6 = vpack.c.bf16 %v1157_v53, %v1151_v50  ;;  %v5495_v20 = vpack.c.bf16 %v843_v61, %v841_v58  ;;  %v5497_v23 = vpack.c.bf16 %v907_v63, %v905_v62  ;;  %v1177_v50 = vld [vmem:[#allocation6 + $0x568] sm:$0xff]  ;;  %v1183_v53 = vld [vmem:[#allocation6 + $0x598] sm:$0xff] }
  0x8b   :  { %1374 = vmatprep.mubr.bf16.mxu0 %v5471_v40  ;;  %1534 = vmatprep.mubr.bf16.mxu1 %v5473_v41  ;;  %v1270_v24 = vpack.c.bf16 %v1156_v3, %v1150_v2  ;;  %v909_v58 = vld [vmem:[#allocation3 + $0x308] sm:$0xff]  ;;  %v911_v61 = vld [vmem:[#allocation3 + $0x318] sm:$0xff]  ;;  %v1283_v2 = vpack.c.bf16 %v1181_v49, %v1175_v47  ;;  %v1285_v3 = vpack.c.bf16 %v1183_v53, %v1177_v50  ;;  %v908_v47 = vld [vmem:[#allocation3 + $0x300] sm:$0xff] }
  0x8c   :  { %1662 = vmatpush1.bf16.msra.mxu1 %v1246_v42  ;;  %2015 = vmatpush1.bf16.msra.mxu0 %v1248_v43  ;;  %v900_v42 = vld [vmem:[#allocation3 + $0x2c0] sm:$0xff]  ;;  %v902_v43 = vld [vmem:[#allocation3 + $0x2d0] sm:$0xff]  ;;  %v849_v50 = vld [vmem:[#allocation3 + $0x128] sm:$0xff] }
  0x8d   :  { %1663 = vmatprep.subr.bf16.mxu1 %v1253_v54  ;;  %2016 = vmatprep.subr.bf16.mxu0 %v1255_v55  ;;  %v1153_v54 = vld [vmem:[#allocation6 + $0x4a8] sm:$0xff]  ;;  %v1159_v55 = vld [vmem:[#allocation6 + $0x4d8] sm:$0xff]  ;;  %v910_v49 = vld [vmem:[#allocation3 + $0x310] sm:$0xff] }
  0x8e   :  { %v1273_v7 = vpack.c.bf16 %v1159_v55, %v1153_v54  ;;  %v845_v54 = vld [vmem:[#allocation3 + $0x108] sm:$0xff]  ;;  %v847_v55 = vld [vmem:[#allocation3 + $0x118] sm:$0xff] }
  0x8f   :  { %v851_v53 = vld [vmem:[#allocation3 + $0x138] sm:$0xff] }
  0x90   :  { %1664 = vmatpush1.bf16.msra.mxu1 %v1252_v8  ;;  %2017 = vmatpush1.bf16.msra.mxu0 %v1254_v11  ;;  %v1152_v8 = vld [vmem:[#allocation6 + $0x4a0] sm:$0xff]  ;;  %v1158_v11 = vld [vmem:[#allocation6 + $0x4d0] sm:$0xff] }
  0x91   :  { %1665 = vmatprep.subr.bf16.mxu1 %v1259_v16  ;;  %2018 = vmatprep.subr.bf16.mxu0 %v1261_v17  ;;  %v5493_v16 = vpack.c.bf16 %v902_v43, %v900_v42  ;;  %v1169_v17 = vld [vmem:[#allocation6 + $0x528] sm:$0xff]  ;;  %v1272_v25 = vpack.c.bf16 %v1158_v11, %v1152_v8  ;;  %v1279_v42 = vpack.c.bf16 %v1171_v19, %v1165_v18  ;;  %v1164_v43 = vld [vmem:[#allocation6 + $0x500] sm:$0xff]  ;;  %v1187_v8 = vld [vmem:[#allocation6 + $0x5b8] sm:$0xff] }
  0x92   :  { %1375 = vmatmul.mubr.bf16.gmra.mrb[20].mxu0 %v5479_v21  ;;  %1535 = vmatmul.mubr.bf16.gmra.mrb[20].mxu1 %v5481_v22  ;;  %v1277_v39 = vpack.c.bf16 %v1169_v17, %v1163_v12  ;;  %v5503_v11 = vpack.c.bf16 %v842_v35, %v840_v30  ;;  %v1193_v17 = vld [vmem:[#allocation6 + $0x5e8] sm:$0xff]  ;;  %v1195_v19 = vld [vmem:[#allocation6 + $0x5f8] sm:$0xff]  ;;  %v1192_v30 = vld [vmem:[#allocation6 + $0x5e0] sm:$0xff] }
  0x93   :  { %1384 = vmatprep.mubr.bf16.mxu0 %v5483_v26  ;;  %1544 = vmatprep.mubr.bf16.mxu1 %v5485_v27  ;;  %v1189_v18 = vld [vmem:[#allocation6 + $0x5c8] sm:$0xff]  ;;  %v1188_v35 = vld [vmem:[#allocation6 + $0x5c0] sm:$0xff] }
  0x94   :  { %1666 = vmatpush1.bf16.msra.mxu1 %v1258_v28  ;;  %2019 = vmatpush1.bf16.msra.mxu0 %v1260_v29  ;;  %v1162_v28 = vld [vmem:[#allocation6 + $0x4f0] sm:$0xff]  ;;  %v1168_v29 = vld [vmem:[#allocation6 + $0x520] sm:$0xff] }
  0x95   :  { %1667 = vmatprep.subr.bf16.mxu1 %v1265_v44  ;;  %2020 = vmatprep.subr.bf16.mxu0 %v1267_v46  ;;  %v904_v44 = vld [vmem:[#allocation3 + $0x2e0] sm:$0xff]  ;;  %v1170_v46 = vld [vmem:[#allocation6 + $0x530] sm:$0xff]  ;;  %v1276_v62 = vpack.c.bf16 %v1168_v29, %v1162_v28 }
  0x96   :  { %v1278_v63 = vpack.c.bf16 %v1170_v46, %v1164_v43  ;;  %v5505_v12 = vpack.c.bf16 %v906_v38, %v904_v44  ;;  %v1291_v43 = vpack.c.bf16 %v1195_v19, %v1189_v18  ;;  %v1194_v44 = vld [vmem:[#allocation6 + $0x5f0] sm:$0xff]  ;;  %v844_v38 = vld [vmem:[#allocation3 + $0x100] sm:$0xff]  ;;  %v917_v18 = vld [vmem:[#allocation3 + $0x348] sm:$0xff] }
  0x97   :  { %v846_v46 = vld [vmem:[#allocation3 + $0x110] sm:$0xff]  ;;  %v919_v19 = vld [vmem:[#allocation3 + $0x358] sm:$0xff] }
  0x98   :  { %1668 = vmatpush1.bf16.msra.mxu1 %v1264_v0  ;;  %2021 = vmatpush1.bf16.msra.mxu0 %v1266_v1  ;;  %v1174_v0 = vld [vmem:[#allocation6 + $0x550] sm:$0xff]  ;;  %v1180_v1 = vld [vmem:[#allocation6 + $0x580] sm:$0xff] }
  0x99   :  { %1669 = vmatprep.subr.bf16.mxu1 %v1271_v6  ;;  %2022 = vmatprep.subr.bf16.mxu0 %v1273_v7  ;;  %v1176_v6 = vld [vmem:[#allocation6 + $0x560] sm:$0xff]  ;;  %v1182_v7 = vld [vmem:[#allocation6 + $0x590] sm:$0xff]  ;;  %v1282_v28 = vpack.c.bf16 %v1180_v1, %v1174_v0  ;;  %v5519_v0 = vpack.c.bf16 %v851_v53, %v849_v50 }
  0x9a   :  { %1385 = vmatmul.mubr.bf16.gmra.mrb[24].mxu0 %v5491_v13  ;;  %1545 = vmatmul.mubr.bf16.gmra.mrb[24].mxu1 %v5493_v16  ;;  %v1284_v29 = vpack.c.bf16 %v1182_v7, %v1176_v6  ;;  %v912_v6 = vld [vmem:[#allocation3 + $0x320] sm:$0xff]  ;;  %v914_v7 = vld [vmem:[#allocation3 + $0x330] sm:$0xff] }
  0x9b   :  { %1394 = vmatprep.mubr.bf16.mxu0 %v5495_v20  ;;  %1554 = vmatprep.mubr.bf16.mxu1 %v5497_v23 }
  0x9c   :  { %1670 = vmatpush1.bf16.msra.mxu1 %v1270_v24  ;;  %2023 = vmatpush1.bf16.msra.mxu0 %v1272_v25  ;;  %v5507_v24 = vpack.c.bf16 %v847_v55, %v845_v54  ;;  %v5509_v25 = vpack.c.bf16 %v911_v61, %v909_v58  ;;  %v913_v54 = vld [vmem:[#allocation3 + $0x328] sm:$0xff]  ;;  %v915_v55 = vld [vmem:[#allocation3 + $0x338] sm:$0xff]  ;;  %v1290_v61 = vpack.c.bf16 %v1194_v44, %v1188_v35  ;;  %v916_v35 = vld [vmem:[#allocation3 + $0x340] sm:$0xff] }
  0x9d   :  { %1671 = vmatprep.subr.bf16.mxu1 %v1277_v39  ;;  %2024 = vmatprep.subr.bf16.mxu0 %v1279_v42  ;;  %v1186_v39 = vld [vmem:[#allocation6 + $0x5b0] sm:$0xff]  ;;  %v1289_v42 = vpack.c.bf16 %v1193_v17, %v1187_v8  ;;  %v5521_v1 = vpack.c.bf16 %v915_v55, %v913_v54  ;;  %v853_v8 = vld [vmem:[#allocation3 + $0x148] sm:$0xff]  ;;  %v855_v17 = vld [vmem:[#allocation3 + $0x158] sm:$0xff] }
  0x9e   :  { %v1288_v58 = vpack.c.bf16 %v1192_v30, %v1186_v39  ;;  %v5531_v39 = vpack.c.bf16 %v855_v17, %v853_v8  ;;  %v854_v30 = vld [vmem:[#allocation3 + $0x150] sm:$0xff]  ;;  %v925_v8 = vld [vmem:[#allocation3 + $0x388] sm:$0xff]  ;;  %v927_v17 = vld [vmem:[#allocation3 + $0x398] sm:$0xff] }
  0x9f   :  { %v918_v44 = vld [vmem:[#allocation3 + $0x350] sm:$0xff] }
  0xa0   :  { %1672 = vmatpush1.bf16.msra.mxu1 %v1276_v62  ;;  %2025 = vmatpush1.bf16.msra.mxu0 %v1278_v63  ;;  %v5515_v62 = vpack.c.bf16 %v846_v46, %v844_v38  ;;  %v5517_v63 = vpack.c.bf16 %v910_v49, %v908_v47  ;;  %v857_v38 = vld [vmem:[#allocation3 + $0x168] sm:$0xff]  ;;  %v859_v46 = vld [vmem:[#allocation3 + $0x178] sm:$0xff]  ;;  %v5541_v53 = vpack.c.bf16 %v918_v44, %v916_v35  ;;  %v860_v35 = vld [vmem:[#allocation3 + $0x180] sm:$0xff] }
  0xa1   :  { %1673 = vmatprep.subr.bf16.mxu1 %v1283_v2  ;;  %2026 = vmatprep.subr.bf16.mxu0 %v1285_v3  ;;  %v848_v2 = vld [vmem:[#allocation3 + $0x120] sm:$0xff]  ;;  %v850_v3 = vld [vmem:[#allocation3 + $0x130] sm:$0xff]  ;;  %v921_v47 = vld [vmem:[#allocation3 + $0x368] sm:$0xff]  ;;  %v5543_v54 = vpack.c.bf16 %v859_v46, %v857_v38 }
  0xa2   :  { %1395 = vmatmul.mubr.bf16.gmra.mrb[28].mxu0 %v5503_v11  ;;  %1555 = vmatmul.mubr.bf16.gmra.mrb[28].mxu1 %v5505_v12  ;;  %v923_v49 = vld [vmem:[#allocation3 + $0x378] sm:$0xff]  ;;  %5770 = vst [vmem:[#allocation14_spill] sm:$0xff] %v5541_v53  ;;  %v862_v44 = vld [vmem:[#allocation3 + $0x190] sm:$0xff]  ;;  %v924_v38 = vld [vmem:[#allocation3 + $0x380] sm:$0xff] }
  0xa3   :  { %1404 = vmatprep.mubr.bf16.mxu0 %v5507_v24  ;;  %1564 = vmatprep.mubr.bf16.mxu1 %v5509_v25  ;;  %v5545_v55 = vpack.c.bf16 %v923_v49, %v921_v47  ;;  %v926_v46 = vld [vmem:[#allocation3 + $0x390] sm:$0xff]  ;;  %v865_v47 = vld [vmem:[#allocation3 + $0x1a8] sm:$0xff]  ;;  %v867_v49 = vld [vmem:[#allocation3 + $0x1b8] sm:$0xff] }
  0xa4   :  { %1674 = vmatpush1.bf16.msra.mxu1 %v1282_v28  ;;  %2027 = vmatpush1.bf16.msra.mxu0 %v1284_v29  ;;  %v5527_v28 = vpack.c.bf16 %v850_v3, %v848_v2  ;;  %v5529_v29 = vpack.c.bf16 %v914_v7, %v912_v6  ;;  %v920_v2 = vld [vmem:[#allocation3 + $0x360] sm:$0xff]  ;;  %v922_v3 = vld [vmem:[#allocation3 + $0x370] sm:$0xff]  ;;  %v861_v6 = vld [vmem:[#allocation3 + $0x188] sm:$0xff] }
  0xa5   :  { %1675 = vmatprep.subr.bf16.mxu1 %v1289_v42  ;;  %2028 = vmatprep.subr.bf16.mxu0 %v1291_v43  ;;  %v5533_v42 = vpack.c.bf16 %v919_v19, %v917_v18  ;;  %v852_v43 = vld [vmem:[#allocation3 + $0x140] sm:$0xff]  ;;  %5771 = vst [vmem:[#allocation15_spill] sm:$0xff] %v5545_v55  ;;  %v863_v7 = vld [vmem:[#allocation3 + $0x198] sm:$0xff]  ;;  %v5553_v19 = vpack.c.bf16 %v922_v3, %v920_v2 }
  0xa6   :  { %5768 = vst [vmem:[#allocation12_spill] sm:$0xff] %v5529_v29  ;;  %v5539_v50 = vpack.c.bf16 %v854_v30, %v852_v43  ;;  %v5555_v43 = vpack.c.bf16 %v863_v7, %v861_v6  ;;  %v5557_v30 = vpack.c.bf16 %v927_v17, %v925_v8  ;;  %v5563_v2 = vpack.c.bf16 %v862_v44, %v860_v35  ;;  %v864_v8 = vld [vmem:[#allocation3 + $0x1a0] sm:$0xff]  ;;  %v866_v17 = vld [vmem:[#allocation3 + $0x1b0] sm:$0xff]  ;;  %v869_v35 = vld [vmem:[#allocation3 + $0x1c8] sm:$0xff] }
  0xa7   :  { %5769 = vst [vmem:[#allocation13_spill] sm:$0xff] %v5533_v42  ;;  %5772 = vst [vmem:[#allocation16_spill] sm:$0xff] %v5553_v19  ;;  %v5565_v3 = vpack.c.bf16 %v926_v46, %v924_v38  ;;  %v5567_v6 = vpack.c.bf16 %v867_v49, %v865_v47  ;;  %v871_v44 = vld [vmem:[#allocation3 + $0x1d8] sm:$0xff]  ;;  %v933_v38 = vld [vmem:[#allocation3 + $0x3c8] sm:$0xff]  ;;  %v5575_v47 = vpack.c.bf16 %v866_v17, %v864_v8 }
  0xa8   :  { %1676 = vmatpush1.bf16.msra.mxu1 %v1288_v58  ;;  %2029 = vmatpush1.bf16.msra.mxu0 %v1290_v61  ;;  %v856_v58 = vld [vmem:[#allocation3 + $0x160] sm:$0xff]  ;;  %v858_v61 = vld [vmem:[#allocation3 + $0x170] sm:$0xff]  ;;  %5773 = vst [vmem:[#allocation17_spill] sm:$0xff] %v5557_v30  ;;  %v935_v46 = vld [vmem:[#allocation3 + $0x3d8] sm:$0xff] }
  0xa9   :  { %v5551_v18 = vpack.c.bf16 %v858_v61, %v856_v58  ;;  %v929_v58 = vld [vmem:[#allocation3 + $0x3a8] sm:$0xff]  ;;  %v931_v61 = vld [vmem:[#allocation3 + $0x3b8] sm:$0xff]  ;;  %5774 = vst [vmem:[#allocation18_spill] sm:$0xff] %v5565_v3 }
  0xaa   :  { %1405 = vmatmul.mubr.bf16.gmra.mrb[32].mxu0 %v5515_v62  ;;  %1565 = vmatmul.mubr.bf16.gmra.mrb[32].mxu1 %v5517_v63  ;;  %v5569_v7 = vpack.c.bf16 %v931_v61, %v929_v58  ;;  %v5579_v58 = vpack.c.bf16 %v871_v44, %v869_v35  ;;  %v5581_v61 = vpack.c.bf16 %v935_v46, %v933_v38  ;;  %v873_v8 = vld [vmem:[#allocation3 + $0x1e8] sm:$0xff]  ;;  %v875_v17 = vld [vmem:[#allocation3 + $0x1f8] sm:$0xff] }
  0xab   :  { %1414 = vmatprep.mubr.bf16.mxu0 %v5519_v0  ;;  %1574 = vmatprep.mubr.bf16.mxu1 %v5521_v1  ;;  %v5591_v38 = vpack.c.bf16 %v875_v17, %v873_v8 }
  0xac   :  { %5775 = vst [vmem:[#allocation19_spill] sm:$0xff] %v5569_v7  ;;  %5777 = vst [vmem:[#allocation21_spill] sm:$0xff] %v5581_v61 }
  0xb2   :  { %1415 = vmatmul.mubr.bf16.gmra.mrb[36].mxu0 %v5527_v28  ;;  %1575 = vmatmul.mubr.bf16.gmra.mrb[36].mxu1 %v5529_v29  ;;  %v938_v29 = vld [vmem:[#allocation3 + $0x3f0] sm:$0xff] }
  0xb3   :  { %1424 = vmatprep.mubr.bf16.mxu0 %v5531_v39  ;;  %1584 = vmatprep.mubr.bf16.mxu1 %v5533_v42  ;;  %v936_v42 = vld [vmem:[#allocation3 + $0x3e0] sm:$0xff] }
  0xba   :  { %1425 = vmatmul.mubr.bf16.gmra.mrb[40].mxu0 %v5539_v50  ;;  %1585 = vmatmul.mubr.bf16.gmra.mrb[40].mxu1 %v5541_v53  ;;  %v934_v53 = vld [vmem:[#allocation3 + $0x3d0] sm:$0xff] }
  0xbb   :  { %1434 = vmatprep.mubr.bf16.mxu0 %v5543_v54  ;;  %1594 = vmatprep.mubr.bf16.mxu1 %v5545_v55  ;;  %v932_v55 = vld [vmem:[#allocation3 + $0x3c0] sm:$0xff] }
  0xbc   :  { %v5589_v44 = vpack.c.bf16 %v934_v53, %v932_v55  ;;  %v5601_v53 = vpack.c.bf16 %v938_v29, %v936_v42 }
  0xc2   :  { %1435 = vmatmul.mubr.bf16.gmra.mrb[44].mxu0 %v5551_v18  ;;  %1595 = vmatmul.mubr.bf16.gmra.mrb[44].mxu1 %v5553_v19  ;;  %v930_v19 = vld [vmem:[#allocation3 + $0x3b0] sm:$0xff] }
  0xc3   :  { %1444 = vmatprep.mubr.bf16.mxu0 %v5555_v43  ;;  %1604 = vmatprep.mubr.bf16.mxu1 %v5557_v30  ;;  %v928_v30 = vld [vmem:[#allocation3 + $0x3a0] sm:$0xff] }
  0xc4   :  { %v5577_v49 = vpack.c.bf16 %v930_v19, %v928_v30  ;;  %v937_v19 = vld [vmem:[#allocation3 + $0x3e8] sm:$0xff]  ;;  %v939_v30 = vld [vmem:[#allocation3 + $0x3f8] sm:$0xff] }
  0xc5   :  { %v5593_v46 = vpack.c.bf16 %v939_v30, %v937_v19 }
  0xc6   :  { %5776 = vst [vmem:[#allocation20_spill] sm:$0xff] %v5577_v49 }
  0xca   :  { %1445 = vmatmul.mubr.bf16.gmra.mrb[48].mxu0 %v5563_v2  ;;  %1605 = vmatmul.mubr.bf16.gmra.mrb[48].mxu1 %v5565_v3  ;;  %v868_v3 = vld [vmem:[#allocation3 + $0x1c0] sm:$0xff] }
  0xcb   :  { %1454 = vmatprep.mubr.bf16.mxu0 %v5567_v6  ;;  %1614 = vmatprep.mubr.bf16.mxu1 %v5569_v7  ;;  %v870_v7 = vld [vmem:[#allocation3 + $0x1d0] sm:$0xff] }
  0xcc   :  { %v5587_v35 = vpack.c.bf16 %v870_v7, %v868_v3 }
  0xd2   :  { %1455 = vmatmul.mubr.bf16.gmra.mrb[52].mxu0 %v5575_v47  ;;  %1615 = vmatmul.mubr.bf16.gmra.mrb[52].mxu1 %v5577_v49  ;;  %v872_v49 = vld [vmem:[#allocation3 + $0x1e0] sm:$0xff] }
  0xd3   :  { %1464 = vmatprep.mubr.bf16.mxu0 %v5579_v58  ;;  %1624 = vmatprep.mubr.bf16.mxu1 %v5581_v61  ;;  %v874_v61 = vld [vmem:[#allocation3 + $0x1f0] sm:$0xff] }
  0xd4   :  { %v5599_v3 = vpack.c.bf16 %v874_v61, %v872_v49 }
  0xda   :  { %1465 = vmatmul.mubr.bf16.gmra.mrb[56].mxu0 %v5587_v35  ;;  %1625 = vmatmul.mubr.bf16.gmra.mrb[56].mxu1 %v5589_v44 }
  0xdb   :  { %1474 = vmatprep.mubr.bf16.mxu0 %v5591_v38  ;;  %1634 = vmatprep.mubr.bf16.mxu1 %v5593_v46 }
  0xe2   :  { %1475 = vmatmul.mubr.bf16.gmra.mrb[60].mxu0 %v5599_v3  ;;  %1635 = vmatmul.mubr.bf16.gmra.mrb[60].mxu1 %v5601_v53 }
  0xe3   :  { %1677 = vmatprep.mubr.bf16.mxu1 %v5413_v45  ;;  %2030 = vmatprep.mubr.bf16.mxu0 %v5413_v45 }
  0xea   :  { %1678 = vmatmul.mubr.bf16.vlgmr.msra.gmra.mrb[64].mxu1 %v5419_v59  ;;  %2031 = vmatmul.mubr.bf16.vlgmr.msra.gmra.mrb[64].mxu0 %v5419_v59 }
  0xeb   :  { %1687 = vmatprep.mubr.bf16.mxu1 %v5423_v4  ;;  %2040 = vmatprep.mubr.bf16.mxu0 %v5423_v4 }
  0xf2   :  { %1688 = vmatmul.mubr.bf16.gmra.mrb[68].mxu1 %v5431_v31  ;;  %2041 = vmatmul.mubr.bf16.gmra.mrb[68].mxu0 %v5431_v31 }
  0xf3   :  { %1697 = vmatprep.mubr.bf16.mxu1 %v5435_v36  ;;  %2050 = vmatprep.mubr.bf16.mxu0 %v5435_v36 }
  0xfa   :  { %1698 = vmatmul.mubr.bf16.gmra.mrb[72].mxu1 %v5443_v9  ;;  %2051 = vmatmul.mubr.bf16.gmra.mrb[72].mxu0 %v5443_v9 }
  0xfb   :  { %1707 = vmatprep.mubr.bf16.mxu1 %v5447_v14  ;;  %2060 = vmatprep.mubr.bf16.mxu0 %v5447_v14 }
 0x102   :  { %1708 = vmatmul.mubr.bf16.gmra.mrb[76].mxu1 %v5455_v51  ;;  %2061 = vmatmul.mubr.bf16.gmra.mrb[76].mxu0 %v5455_v51 }
 0x103   :  { %1717 = vmatprep.mubr.bf16.mxu1 %v5459_v56  ;;  %2070 = vmatprep.mubr.bf16.mxu0 %v5459_v56 }
 0x10a   :  { %1718 = vmatmul.mubr.bf16.gmra.mrb[80].mxu1 %v5467_v33  ;;  %2071 = vmatmul.mubr.bf16.gmra.mrb[80].mxu0 %v5467_v33 }
 0x10b   :  { %1727 = vmatprep.mubr.bf16.mxu1 %v5471_v40  ;;  %2080 = vmatprep.mubr.bf16.mxu0 %v5471_v40 }
 0x112   :  { %1728 = vmatmul.mubr.bf16.gmra.mrb[84].mxu1 %v5479_v21  ;;  %2081 = vmatmul.mubr.bf16.gmra.mrb[84].mxu0 %v5479_v21 }
 0x113   :  { %1737 = vmatprep.mubr.bf16.mxu1 %v5483_v26  ;;  %2090 = vmatprep.mubr.bf16.mxu0 %v5483_v26 }
 0x11a   :  { %1738 = vmatmul.mubr.bf16.gmra.mrb[88].mxu1 %v5491_v13  ;;  %2091 = vmatmul.mubr.bf16.gmra.mrb[88].mxu0 %v5491_v13 }
 0x11b   :  { %1747 = vmatprep.mubr.bf16.mxu1 %v5495_v20  ;;  %2100 = vmatprep.mubr.bf16.mxu0 %v5495_v20 }
 0x122   :  { %1748 = vmatmul.mubr.bf16.gmra.mrb[92].mxu1 %v5503_v11  ;;  %2101 = vmatmul.mubr.bf16.gmra.mrb[92].mxu0 %v5503_v11 }
 0x123   :  { %1757 = vmatprep.mubr.bf16.mxu1 %v5507_v24  ;;  %2110 = vmatprep.mubr.bf16.mxu0 %v5507_v24 }
 0x12a   :  { %1758 = vmatmul.mubr.bf16.gmra.mrb[96].mxu1 %v5515_v62  ;;  %2111 = vmatmul.mubr.bf16.gmra.mrb[96].mxu0 %v5515_v62 }
 0x12b   :  { %1767 = vmatprep.mubr.bf16.mxu1 %v5519_v0  ;;  %2120 = vmatprep.mubr.bf16.mxu0 %v5519_v0 }
 0x132   :  { %1768 = vmatmul.mubr.bf16.gmra.mrb[100].mxu1 %v5527_v28  ;;  %2121 = vmatmul.mubr.bf16.gmra.mrb[100].mxu0 %v5527_v28 }
 0x133   :  { %1777 = vmatprep.mubr.bf16.mxu1 %v5531_v39  ;;  %2130 = vmatprep.mubr.bf16.mxu0 %v5531_v39 }
 0x13a   :  { %1778 = vmatmul.mubr.bf16.gmra.mrb[104].mxu1 %v5539_v50  ;;  %2131 = vmatmul.mubr.bf16.gmra.mrb[104].mxu0 %v5539_v50 }
 0x13b   :  { %1787 = vmatprep.mubr.bf16.mxu1 %v5543_v54  ;;  %2140 = vmatprep.mubr.bf16.mxu0 %v5543_v54 }
 0x13d   :  { %v1326_v45 = vpop.f32.mrb[0].mxu0  ;;  %v1486_v59 = vpop.f32.mrb[0].mxu1 }
 0x13e   :  { %v1328_v4 = vpop.f32.mrb[1].mxu0  ;;  %v1488_v31 = vpop.f32.mrb[1].mxu1 }
 0x13f   :  { %v5060_v36 = vpack.c.bf16 %v1328_v4, %v1326_v45  ;;  %v5156_v9 = vpack.c.bf16 %v1488_v31, %v1486_v59  ;;  %v1330_v14 = vpop.f32.mrb[2].mxu0  ;;  %v1490_v51 = vpop.f32.mrb[2].mxu1 }
 0x140   :  { %v1332_v56 = vpop.f32.mrb[3].mxu0  ;;  %v1492_v33 = vpop.f32.mrb[3].mxu1 }
 0x141   :  { %4658 = vst [vmem:[#allocation8] sm:$0xff] %v5060_v36  ;;  %4754 = vst [vmem:[#allocation8 + $0x300] sm:$0xff] %v5156_v9  ;;  %v5063_v40 = vpack.c.bf16 %v1332_v56, %v1330_v14  ;;  %v5159_v21 = vpack.c.bf16 %v1492_v33, %v1490_v51 }
 0x142   :  { %1788 = vmatmul.mubr.bf16.gmra.mrb[108].mxu1 %v5551_v18  ;;  %2141 = vmatmul.mubr.bf16.gmra.mrb[108].mxu0 %v5551_v18 }
 0x143   :  { %4661 = vst [vmem:[#allocation8 + $0x18] sm:$0xff] %v5063_v40  ;;  %4757 = vst [vmem:[#allocation8 + $0x318] sm:$0xff] %v5159_v21  ;;  %1797 = vmatprep.mubr.bf16.mxu1 %v5555_v43  ;;  %2150 = vmatprep.mubr.bf16.mxu0 %v5555_v43 }
 0x145   :  { %v1336_v26 = vpop.f32.mrb[4].mxu0  ;;  %v1496_v13 = vpop.f32.mrb[4].mxu1 }
 0x146   :  { %v1338_v20 = vpop.f32.mrb[5].mxu0  ;;  %v1498_v11 = vpop.f32.mrb[5].mxu1 }
 0x147   :  { %v5066_v24 = vpack.c.bf16 %v1338_v20, %v1336_v26  ;;  %v5162_v62 = vpack.c.bf16 %v1498_v11, %v1496_v13  ;;  %v1340_v0 = vpop.f32.mrb[6].mxu0  ;;  %v1500_v28 = vpop.f32.mrb[6].mxu1 }
 0x148   :  { %v1342_v29 = vpop.f32.mrb[7].mxu0  ;;  %v1502_v39 = vpop.f32.mrb[7].mxu1 }
 0x149   :  { %4664 = vst [vmem:[#allocation8 + $0x30] sm:$0xff] %v5066_v24  ;;  %4760 = vst [vmem:[#allocation8 + $0x330] sm:$0xff] %v5162_v62  ;;  %v5069_v42 = vpack.c.bf16 %v1342_v29, %v1340_v0  ;;  %v5165_v50 = vpack.c.bf16 %v1502_v39, %v1500_v28 }
 0x14a   :  { %1798 = vmatmul.mubr.bf16.gmra.mrb[112].mxu1 %v5563_v2  ;;  %2151 = vmatmul.mubr.bf16.gmra.mrb[112].mxu0 %v5563_v2 }
 0x14b   :  { %4667 = vst [vmem:[#allocation8 + $0x48] sm:$0xff] %v5069_v42  ;;  %4763 = vst [vmem:[#allocation8 + $0x348] sm:$0xff] %v5165_v50  ;;  %1807 = vmatprep.mubr.bf16.mxu1 %v5567_v6  ;;  %2160 = vmatprep.mubr.bf16.mxu0 %v5567_v6 }
 0x14d   :  { %v1346_v54 = vpop.f32.mrb[8].mxu0  ;;  %v1506_v55 = vpop.f32.mrb[8].mxu1 }
 0x14e   :  { %v1348_v18 = vpop.f32.mrb[9].mxu0  ;;  %v1508_v43 = vpop.f32.mrb[9].mxu1 }
 0x14f   :  { %v5072_v7 = vpack.c.bf16 %v1348_v18, %v1346_v54  ;;  %v5168_v49 = vpack.c.bf16 %v1508_v43, %v1506_v55  ;;  %v1350_v61 = vpop.f32.mrb[10].mxu0  ;;  %v1510_v8 = vpop.f32.mrb[10].mxu1 }
 0x150   :  { %v1352_v17 = vpop.f32.mrb[11].mxu0  ;;  %v1512_v19 = vpop.f32.mrb[11].mxu1 }
 0x151   :  { %4670 = vst [vmem:[#allocation8 + $0x60] sm:$0xff] %v5072_v7  ;;  %4766 = vst [vmem:[#allocation8 + $0x360] sm:$0xff] %v5168_v49  ;;  %v5075_v30 = vpack.c.bf16 %v1352_v17, %v1350_v61  ;;  %v5171_v2 = vpack.c.bf16 %v1512_v19, %v1510_v8 }
 0x152   :  { %1808 = vmatmul.mubr.bf16.gmra.mrb[116].mxu1 %v5575_v47  ;;  %2161 = vmatmul.mubr.bf16.gmra.mrb[116].mxu0 %v5575_v47 }
 0x153   :  { %4673 = vst [vmem:[#allocation8 + $0x78] sm:$0xff] %v5075_v30  ;;  %4769 = vst [vmem:[#allocation8 + $0x378] sm:$0xff] %v5171_v2  ;;  %1817 = vmatprep.mubr.bf16.mxu1 %v5579_v58  ;;  %2170 = vmatprep.mubr.bf16.mxu0 %v5579_v58 }
 0x155   :  { %v1356_v6 = vpop.f32.mrb[12].mxu0  ;;  %v1516_v45 = vpop.f32.mrb[12].mxu1 }
 0x156   :  { %v1358_v59 = vpop.f32.mrb[13].mxu0  ;;  %v1518_v4 = vpop.f32.mrb[13].mxu1 }
 0x157   :  { %v5078_v31 = vpack.c.bf16 %v1358_v59, %v1356_v6  ;;  %v5174_v36 = vpack.c.bf16 %v1518_v4, %v1516_v45  ;;  %v1360_v9 = vpop.f32.mrb[14].mxu0  ;;  %v1520_v14 = vpop.f32.mrb[14].mxu1 }
 0x158   :  { %v1362_v51 = vpop.f32.mrb[15].mxu0  ;;  %v1522_v56 = vpop.f32.mrb[15].mxu1 }
 0x159   :  { %4676 = vst [vmem:[#allocation8 + $0x90] sm:$0xff] %v5078_v31  ;;  %4772 = vst [vmem:[#allocation8 + $0x390] sm:$0xff] %v5174_v36  ;;  %v5081_v33 = vpack.c.bf16 %v1362_v51, %v1360_v9  ;;  %v5177_v47 = vpack.c.bf16 %v1522_v56, %v1520_v14 }
 0x15a   :  { %1818 = vmatmul.mubr.bf16.gmra.mrb[120].mxu1 %v5587_v35  ;;  %2171 = vmatmul.mubr.bf16.gmra.mrb[120].mxu0 %v5587_v35 }
 0x15b   :  { %4679 = vst [vmem:[#allocation8 + $0xa8] sm:$0xff] %v5081_v33  ;;  %4775 = vst [vmem:[#allocation8 + $0x3a8] sm:$0xff] %v5177_v47  ;;  %1827 = vmatprep.mubr.bf16.mxu1 %v5591_v38  ;;  %2180 = vmatprep.mubr.bf16.mxu0 %v5591_v38 }
 0x15d   :  { %v1366_v58 = vpop.f32.mrb[16].mxu0  ;;  %v1526_v40 = vpop.f32.mrb[16].mxu1 }
 0x15e   :  { %v1368_v21 = vpop.f32.mrb[17].mxu0  ;;  %v1528_v26 = vpop.f32.mrb[17].mxu1 }
 0x15f   :  { %v5084_v13 = vpack.c.bf16 %v1368_v21, %v1366_v58  ;;  %v5180_v20 = vpack.c.bf16 %v1528_v26, %v1526_v40  ;;  %v1370_v11 = vpop.f32.mrb[18].mxu0  ;;  %v1530_v24 = vpop.f32.mrb[18].mxu1 }
 0x160   :  { %v1372_v62 = vpop.f32.mrb[19].mxu0  ;;  %v1532_v0 = vpop.f32.mrb[19].mxu1 }
 0x161   :  { %4682 = vst [vmem:[#allocation8 + $0xc0] sm:$0xff] %v5084_v13  ;;  %4778 = vst [vmem:[#allocation8 + $0x3c0] sm:$0xff] %v5180_v20  ;;  %v5087_v28 = vpack.c.bf16 %v1372_v62, %v1370_v11  ;;  %v5183_v35 = vpack.c.bf16 %v1532_v0, %v1530_v24 }
 0x162   :  { %1828 = vmatmul.mubr.bf16.gmra.mrb[124].mxu1 %v5599_v3  ;;  %2181 = vmatmul.mubr.bf16.gmra.mrb[124].mxu0 %v5599_v3 }
 0x163   :  { %4685 = vst [vmem:[#allocation8 + $0xd8] sm:$0xff] %v5087_v28  ;;  %4781 = vst [vmem:[#allocation8 + $0x3d8] sm:$0xff] %v5183_v35  ;;  %1837 = vmatprep.mubr.bf16.mxu1 %v5415_v48  ;;  %2190 = vmatprep.mubr.bf16.mxu0 %v5415_v48 }
 0x165   :  { %v1376_v38 = vpop.f32.mrb[20].mxu0  ;;  %v1536_v29 = vpop.f32.mrb[20].mxu1 }
 0x166   :  { %v1378_v39 = vpop.f32.mrb[21].mxu0  ;;  %v1538_v42 = vpop.f32.mrb[21].mxu1 }
 0x167   :  { %v5090_v50 = vpack.c.bf16 %v1378_v39, %v1376_v38  ;;  %v5186_v54 = vpack.c.bf16 %v1538_v42, %v1536_v29  ;;  %v1380_v55 = vpop.f32.mrb[22].mxu0  ;;  %v1540_v18 = vpop.f32.mrb[22].mxu1 }
 0x168   :  { %v1382_v43 = vpop.f32.mrb[23].mxu0  ;;  %v1542_v7 = vpop.f32.mrb[23].mxu1 }
 0x169   :  { %4688 = vst [vmem:[#allocation8 + $0xf0] sm:$0xff] %v5090_v50  ;;  %4784 = vst [vmem:[#allocation8 + $0x3f0] sm:$0xff] %v5186_v54  ;;  %v5093_v49 = vpack.c.bf16 %v1382_v43, %v1380_v55  ;;  %v5189_v3 = vpack.c.bf16 %v1542_v7, %v1540_v18 }
 0x16a   :  { %1838 = vmatmul.mubr.bf16.gmra.mrb[128].mxu1 %v5421_v60  ;;  %2191 = vmatmul.mubr.bf16.gmra.mrb[128].mxu0 %v5421_v60 }
 0x16b   :  { %4691 = vst [vmem:[#allocation8 + $0x108] sm:$0xff] %v5093_v49  ;;  %4787 = vst [vmem:[#allocation8 + $0x408] sm:$0xff] %v5189_v3  ;;  %1847 = vmatprep.mubr.bf16.mxu1 %v5425_v5  ;;  %2200 = vmatprep.mubr.bf16.mxu0 %v5425_v5 }
 0x16d   :  { %v1386_v48 = vpop.f32.mrb[24].mxu0  ;;  %v1546_v61 = vpop.f32.mrb[24].mxu1 }
 0x16e   :  { %v1388_v8 = vpop.f32.mrb[25].mxu0  ;;  %v1548_v17 = vpop.f32.mrb[25].mxu1 }
 0x16f   :  { %v5096_v19 = vpack.c.bf16 %v1388_v8, %v1386_v48  ;;  %v5192_v30 = vpack.c.bf16 %v1548_v17, %v1546_v61  ;;  %v1390_v2 = vpop.f32.mrb[26].mxu0  ;;  %v1550_v6 = vpop.f32.mrb[26].mxu1 }
 0x170   :  { %v1392_v45 = vpop.f32.mrb[27].mxu0  ;;  %v1552_v59 = vpop.f32.mrb[27].mxu1 }
 0x171   :  { %4694 = vst [vmem:[#allocation8 + $0x120] sm:$0xff] %v5096_v19  ;;  %4790 = vst [vmem:[#allocation8 + $0x420] sm:$0xff] %v5192_v30  ;;  %v5099_v4 = vpack.c.bf16 %v1392_v45, %v1390_v2  ;;  %v5195_v60 = vpack.c.bf16 %v1552_v59, %v1550_v6 }
 0x172   :  { %1848 = vmatmul.mubr.bf16.gmra.mrb[132].mxu1 %v5433_v32  ;;  %2201 = vmatmul.mubr.bf16.gmra.mrb[132].mxu0 %v5433_v32 }
 0x173   :  { %4697 = vst [vmem:[#allocation8 + $0x138] sm:$0xff] %v5099_v4  ;;  %4793 = vst [vmem:[#allocation8 + $0x438] sm:$0xff] %v5195_v60  ;;  %1857 = vmatprep.mubr.bf16.mxu1 %v5437_v37  ;;  %2210 = vmatprep.mubr.bf16.mxu0 %v5437_v37 }
 0x175   :  { %v1396_v5 = vpop.f32.mrb[28].mxu0  ;;  %v1556_v31 = vpop.f32.mrb[28].mxu1 }
 0x176   :  { %v1398_v36 = vpop.f32.mrb[29].mxu0  ;;  %v1558_v9 = vpop.f32.mrb[29].mxu1 }
 0x177   :  { %v5102_v14 = vpack.c.bf16 %v1398_v36, %v1396_v5  ;;  %v5198_v51 = vpack.c.bf16 %v1558_v9, %v1556_v31  ;;  %v1400_v56 = vpop.f32.mrb[30].mxu0  ;;  %v1560_v33 = vpop.f32.mrb[30].mxu1 }
 0x178   :  { %v1402_v47 = vpop.f32.mrb[31].mxu0  ;;  %v1562_v58 = vpop.f32.mrb[31].mxu1 }
 0x179   :  { %4700 = vst [vmem:[#allocation8 + $0x150] sm:$0xff] %v5102_v14  ;;  %4796 = vst [vmem:[#allocation8 + $0x450] sm:$0xff] %v5198_v51  ;;  %v5105_v40 = vpack.c.bf16 %v1402_v47, %v1400_v56  ;;  %v5201_v32 = vpack.c.bf16 %v1562_v58, %v1560_v33 }
 0x17a   :  { %1858 = vmatmul.mubr.bf16.gmra.mrb[136].mxu1 %v5445_v10  ;;  %2211 = vmatmul.mubr.bf16.gmra.mrb[136].mxu0 %v5445_v10 }
 0x17b   :  { %4703 = vst [vmem:[#allocation8 + $0x168] sm:$0xff] %v5105_v40  ;;  %4799 = vst [vmem:[#allocation8 + $0x468] sm:$0xff] %v5201_v32  ;;  %1867 = vmatprep.mubr.bf16.mxu1 %v5449_v15  ;;  %2220 = vmatprep.mubr.bf16.mxu0 %v5449_v15 }
 0x17d   :  { %v1406_v37 = vpop.f32.mrb[32].mxu0  ;;  %v1566_v21 = vpop.f32.mrb[32].mxu1 }
 0x17e   :  { %v1408_v26 = vpop.f32.mrb[33].mxu0  ;;  %v1568_v13 = vpop.f32.mrb[33].mxu1 }
 0x17f   :  { %v5108_v20 = vpack.c.bf16 %v1408_v26, %v1406_v37  ;;  %v5204_v11 = vpack.c.bf16 %v1568_v13, %v1566_v21  ;;  %v1410_v24 = vpop.f32.mrb[34].mxu0  ;;  %v1570_v62 = vpop.f32.mrb[34].mxu1 }
 0x180   :  { %v1412_v0 = vpop.f32.mrb[35].mxu0  ;;  %v1572_v28 = vpop.f32.mrb[35].mxu1 }
 0x181   :  { %4706 = vst [vmem:[#allocation8 + $0x180] sm:$0xff] %v5108_v20  ;;  %4802 = vst [vmem:[#allocation8 + $0x480] sm:$0xff] %v5204_v11  ;;  %v5111_v35 = vpack.c.bf16 %v1412_v0, %v1410_v24  ;;  %v5207_v10 = vpack.c.bf16 %v1572_v28, %v1570_v62 }
 0x182   :  { %1868 = vmatmul.mubr.bf16.gmra.mrb[140].mxu1 %v5457_v52  ;;  %2221 = vmatmul.mubr.bf16.gmra.mrb[140].mxu0 %v5457_v52 }
 0x183   :  { %4709 = vst [vmem:[#allocation8 + $0x198] sm:$0xff] %v5111_v35  ;;  %4805 = vst [vmem:[#allocation8 + $0x498] sm:$0xff] %v5207_v10  ;;  %1877 = vmatprep.mubr.bf16.mxu1 %v5461_v57  ;;  %2230 = vmatprep.mubr.bf16.mxu0 %v5461_v57 }
 0x185   :  { %v1416_v15 = vpop.f32.mrb[36].mxu0  ;;  %v1576_v38 = vpop.f32.mrb[36].mxu1 }
 0x186   :  { %v1418_v29 = vpop.f32.mrb[37].mxu0  ;;  %v1578_v39 = vpop.f32.mrb[37].mxu1 }
 0x187   :  { %v5114_v42 = vpack.c.bf16 %v1418_v29, %v1416_v15  ;;  %v5210_v50 = vpack.c.bf16 %v1578_v39, %v1576_v38  ;;  %v1420_v54 = vpop.f32.mrb[38].mxu0  ;;  %v1580_v55 = vpop.f32.mrb[38].mxu1 }
 0x188   :  { %v1422_v18 = vpop.f32.mrb[39].mxu0  ;;  %v1582_v43 = vpop.f32.mrb[39].mxu1 }
 0x189   :  { %4712 = vst [vmem:[#allocation8 + $0x1b0] sm:$0xff] %v5114_v42  ;;  %4808 = vst [vmem:[#allocation8 + $0x4b0] sm:$0xff] %v5210_v50  ;;  %v5117_v7 = vpack.c.bf16 %v1422_v18, %v1420_v54  ;;  %v5213_v52 = vpack.c.bf16 %v1582_v43, %v1580_v55 }
 0x18a   :  { %1878 = vmatmul.mubr.bf16.gmra.mrb[144].mxu1 %v5469_v34  ;;  %2231 = vmatmul.mubr.bf16.gmra.mrb[144].mxu0 %v5469_v34 }
 0x18b   :  { %4715 = vst [vmem:[#allocation8 + $0x1c8] sm:$0xff] %v5117_v7  ;;  %4811 = vst [vmem:[#allocation8 + $0x4c8] sm:$0xff] %v5213_v52  ;;  %1887 = vmatprep.mubr.bf16.mxu1 %v5473_v41  ;;  %2240 = vmatprep.mubr.bf16.mxu0 %v5473_v41 }
 0x18d   :  { %v1426_v57 = vpop.f32.mrb[40].mxu0  ;;  %v1586_v49 = vpop.f32.mrb[40].mxu1 }
 0x18e   :  { %v1428_v3 = vpop.f32.mrb[41].mxu0  ;;  %v1588_v48 = vpop.f32.mrb[41].mxu1 }
 0x18f   :  { %v5120_v61 = vpack.c.bf16 %v1428_v3, %v1426_v57  ;;  %v5216_v8 = vpack.c.bf16 %v1588_v48, %v1586_v49  ;;  %v1430_v17 = vpop.f32.mrb[42].mxu0  ;;  %v1590_v19 = vpop.f32.mrb[42].mxu1  ;;  %v5778_v57 = vld [vmem:[#allocation12_spill] sm:$0xff] }
 0x190   :  { %v1432_v30 = vpop.f32.mrb[43].mxu0  ;;  %v1592_v2 = vpop.f32.mrb[43].mxu1 }
 0x191   :  { %4718 = vst [vmem:[#allocation8 + $0x1e0] sm:$0xff] %v5120_v61  ;;  %4814 = vst [vmem:[#allocation8 + $0x4e0] sm:$0xff] %v5216_v8  ;;  %v5123_v6 = vpack.c.bf16 %v1432_v30, %v1430_v17  ;;  %v5219_v34 = vpack.c.bf16 %v1592_v2, %v1590_v19 }
 0x192   :  { %1888 = vmatmul.mubr.bf16.gmra.mrb[148].mxu1 %v5481_v22  ;;  %2241 = vmatmul.mubr.bf16.gmra.mrb[148].mxu0 %v5481_v22 }
 0x193   :  { %4721 = vst [vmem:[#allocation8 + $0x1f8] sm:$0xff] %v5123_v6  ;;  %4817 = vst [vmem:[#allocation8 + $0x4f8] sm:$0xff] %v5219_v34  ;;  %1897 = vmatprep.mubr.bf16.mxu1 %v5485_v27  ;;  %2250 = vmatprep.mubr.bf16.mxu0 %v5485_v27 }
 0x195   :  { %v1436_v41 = vpop.f32.mrb[44].mxu0  ;;  %v1596_v45 = vpop.f32.mrb[44].mxu1 }
 0x196   :  { %v1438_v59 = vpop.f32.mrb[45].mxu0  ;;  %v1598_v4 = vpop.f32.mrb[45].mxu1 }
 0x197   :  { %v5126_v60 = vpack.c.bf16 %v1438_v59, %v1436_v41  ;;  %v5222_v5 = vpack.c.bf16 %v1598_v4, %v1596_v45  ;;  %v1440_v31 = vpop.f32.mrb[46].mxu0  ;;  %v1600_v36 = vpop.f32.mrb[46].mxu1  ;;  %v5780_v45 = vld [vmem:[#allocation14_spill] sm:$0xff]  ;;  %v5781_v59 = vld [vmem:[#allocation15_spill] sm:$0xff] }
 0x198   :  { %v1442_v9 = vpop.f32.mrb[47].mxu0  ;;  %v1602_v14 = vpop.f32.mrb[47].mxu1 }
 0x199   :  { %4724 = vst [vmem:[#allocation8 + $0x210] sm:$0xff] %v5126_v60  ;;  %4820 = vst [vmem:[#allocation8 + $0x510] sm:$0xff] %v5222_v5  ;;  %v5129_v51 = vpack.c.bf16 %v1442_v9, %v1440_v31  ;;  %v5225_v22 = vpack.c.bf16 %v1602_v14, %v1600_v36 }
 0x19a   :  { %1898 = vmatmul.mubr.bf16.gmra.mrb[152].mxu1 %v5493_v16  ;;  %2251 = vmatmul.mubr.bf16.gmra.mrb[152].mxu0 %v5493_v16 }
 0x19b   :  { %4727 = vst [vmem:[#allocation8 + $0x228] sm:$0xff] %v5129_v51  ;;  %4823 = vst [vmem:[#allocation8 + $0x528] sm:$0xff] %v5225_v22  ;;  %1907 = vmatprep.mubr.bf16.mxu1 %v5497_v23  ;;  %2260 = vmatprep.mubr.bf16.mxu0 %v5497_v23 }
 0x19d   :  { %v1446_v27 = vpop.f32.mrb[48].mxu0  ;;  %v1606_v56 = vpop.f32.mrb[48].mxu1 }
 0x19e   :  { %v1448_v33 = vpop.f32.mrb[49].mxu0  ;;  %v1608_v47 = vpop.f32.mrb[49].mxu1 }
 0x19f   :  { %v5132_v58 = vpack.c.bf16 %v1448_v33, %v1446_v27  ;;  %v5228_v40 = vpack.c.bf16 %v1608_v47, %v1606_v56  ;;  %v1450_v32 = vpop.f32.mrb[50].mxu0  ;;  %v1610_v37 = vpop.f32.mrb[50].mxu1  ;;  %v5782_v47 = vld [vmem:[#allocation16_spill] sm:$0xff] }
 0x1a0   :  { %v1452_v21 = vpop.f32.mrb[51].mxu0  ;;  %v1612_v26 = vpop.f32.mrb[51].mxu1 }
 0x1a1   :  { %4730 = vst [vmem:[#allocation8 + $0x240] sm:$0xff] %v5132_v58  ;;  %4826 = vst [vmem:[#allocation8 + $0x540] sm:$0xff] %v5228_v40  ;;  %v5135_v13 = vpack.c.bf16 %v1452_v21, %v1450_v32  ;;  %v5231_v16 = vpack.c.bf16 %v1612_v26, %v1610_v37  ;;  %v5783_v58 = vld [vmem:[#allocation17_spill] sm:$0xff] }
 0x1a2   :  { %1908 = vmatmul.mubr.bf16.gmra.mrb[156].mxu1 %v5505_v12  ;;  %2261 = vmatmul.mubr.bf16.gmra.mrb[156].mxu0 %v5505_v12 }
 0x1a3   :  { %4733 = vst [vmem:[#allocation8 + $0x258] sm:$0xff] %v5135_v13  ;;  %4829 = vst [vmem:[#allocation8 + $0x558] sm:$0xff] %v5231_v16  ;;  %1917 = vmatprep.mubr.bf16.mxu1 %v5509_v25  ;;  %2270 = vmatprep.mubr.bf16.mxu0 %v5509_v25 }
 0x1a5   :  { %v1456_v23 = vpop.f32.mrb[52].mxu0  ;;  %v1616_v20 = vpop.f32.mrb[52].mxu1 }
 0x1a6   :  { %v1458_v11 = vpop.f32.mrb[53].mxu0  ;;  %v1618_v24 = vpop.f32.mrb[53].mxu1 }
 0x1a7   :  { %v5138_v62 = vpack.c.bf16 %v1458_v11, %v1456_v23  ;;  %v5234_v0 = vpack.c.bf16 %v1618_v24, %v1616_v20  ;;  %v1460_v28 = vpop.f32.mrb[54].mxu0  ;;  %v1620_v35 = vpop.f32.mrb[54].mxu1 }
 0x1a8   :  { %v1462_v10 = vpop.f32.mrb[55].mxu0  ;;  %v1622_v15 = vpop.f32.mrb[55].mxu1 }
 0x1a9   :  { %4736 = vst [vmem:[#allocation8 + $0x270] sm:$0xff] %v5138_v62  ;;  %4832 = vst [vmem:[#allocation8 + $0x570] sm:$0xff] %v5234_v0  ;;  %v5141_v38 = vpack.c.bf16 %v1462_v10, %v1460_v28  ;;  %v5237_v12 = vpack.c.bf16 %v1622_v15, %v1620_v35  ;;  %v5784_v0 = vld [vmem:[#allocation18_spill] sm:$0xff]  ;;  %v5785_v28 = vld [vmem:[#allocation19_spill] sm:$0xff] }
 0x1aa   :  { %1918 = vmatmul.mubr.bf16.gmra.mrb[160].mxu1 %v5517_v63  ;;  %2271 = vmatmul.mubr.bf16.gmra.mrb[160].mxu0 %v5517_v63 }
 0x1ab   :  { %4739 = vst [vmem:[#allocation8 + $0x288] sm:$0xff] %v5141_v38  ;;  %4835 = vst [vmem:[#allocation8 + $0x588] sm:$0xff] %v5237_v12  ;;  %1927 = vmatprep.mubr.bf16.mxu1 %v5521_v1  ;;  %2280 = vmatprep.mubr.bf16.mxu0 %v5521_v1  ;;  %v5779_v1 = vld [vmem:[#allocation13_spill] sm:$0xff] }
 0x1ad   :  { %v1466_v25 = vpop.f32.mrb[56].mxu0  ;;  %v1626_v29 = vpop.f32.mrb[56].mxu1 }
 0x1ae   :  { %v1468_v39 = vpop.f32.mrb[57].mxu0  ;;  %v1628_v42 = vpop.f32.mrb[57].mxu1 }
 0x1af   :  { %v5144_v50 = vpack.c.bf16 %v1468_v39, %v1466_v25  ;;  %v5240_v54 = vpack.c.bf16 %v1628_v42, %v1626_v29  ;;  %v1470_v55 = vpop.f32.mrb[58].mxu0  ;;  %v1630_v18 = vpop.f32.mrb[58].mxu1 }
 0x1b0   :  { %v1472_v43 = vpop.f32.mrb[59].mxu0  ;;  %v1632_v7 = vpop.f32.mrb[59].mxu1 }
 0x1b1   :  { %4742 = vst [vmem:[#allocation8 + $0x2a0] sm:$0xff] %v5144_v50  ;;  %4838 = vst [vmem:[#allocation8 + $0x5a0] sm:$0xff] %v5240_v54  ;;  %v5147_v52 = vpack.c.bf16 %v1472_v43, %v1470_v55  ;;  %v5243_v63 = vpack.c.bf16 %v1632_v7, %v1630_v18  ;;  %v5786_v18 = vld [vmem:[#allocation20_spill] sm:$0xff]  ;;  %v5787_v43 = vld [vmem:[#allocation21_spill] sm:$0xff] }
 0x1b2   :  { %1928 = vmatmul.mubr.bf16.gmra.mrb[164].mxu1 %v5778_v57  ;;  %2281 = vmatmul.mubr.bf16.gmra.mrb[164].mxu0 %v5778_v57 }
 0x1b3   :  { %4745 = vst [vmem:[#allocation8 + $0x2b8] sm:$0xff] %v5147_v52  ;;  %4841 = vst [vmem:[#allocation8 + $0x5b8] sm:$0xff] %v5243_v63  ;;  %1937 = vmatprep.mubr.bf16.mxu1 %v5779_v1  ;;  %2290 = vmatprep.mubr.bf16.mxu0 %v5779_v1 }
 0x1b5   :  { %v1476_v49 = vpop.f32.mrb[60].mxu0  ;;  %v1636_v3 = vpop.f32.mrb[60].mxu1 }
 0x1b6   :  { %v1478_v48 = vpop.f32.mrb[61].mxu0  ;;  %v1638_v61 = vpop.f32.mrb[61].mxu1 }
 0x1b7   :  { %v5150_v8 = vpack.c.bf16 %v1478_v48, %v1476_v49  ;;  %v5246_v17 = vpack.c.bf16 %v1638_v61, %v1636_v3  ;;  %v1480_v19 = vpop.f32.mrb[62].mxu0  ;;  %v1640_v30 = vpop.f32.mrb[62].mxu1 }
 0x1b8   :  { %v1482_v2 = vpop.f32.mrb[63].mxu0  ;;  %v1642_v6 = vpop.f32.mrb[63].mxu1 }
 0x1b9   :  { %4748 = vst [vmem:[#allocation8 + $0x2d0] sm:$0xff] %v5150_v8  ;;  %4844 = vst [vmem:[#allocation8 + $0x5d0] sm:$0xff] %v5246_v17  ;;  %v5153_v34 = vpack.c.bf16 %v1482_v2, %v1480_v19  ;;  %v5249_v41 = vpack.c.bf16 %v1642_v6, %v1640_v30 }
 0x1ba   :  { %1938 = vmatmul.mubr.bf16.gmra.mrb[168].mxu1 %v5780_v45  ;;  %2291 = vmatmul.mubr.bf16.gmra.mrb[168].mxu0 %v5780_v45 }
 0x1bb   :  { %4751 = vst [vmem:[#allocation8 + $0x2e8] sm:$0xff] %v5153_v34  ;;  %4847 = vst [vmem:[#allocation8 + $0x5e8] sm:$0xff] %v5249_v41  ;;  %1947 = vmatprep.mubr.bf16.mxu1 %v5781_v59  ;;  %2300 = vmatprep.mubr.bf16.mxu0 %v5781_v59 }
 0x1bd   :  { %v1679_v4 = vpop.f32.mrb[64].mxu1  ;;  %v2032_v60 = vpop.f32.mrb[64].mxu0 }
 0x1be   :  { %v1681_v5 = vpop.f32.mrb[65].mxu1  ;;  %v2034_v31 = vpop.f32.mrb[65].mxu0 }
 0x1bf   :  { %v5061_v36 = vpack.c.bf16 %v1681_v5, %v1679_v4  ;;  %v5062_v9 = vpack.c.bf16 %v2034_v31, %v2032_v60  ;;  %v1683_v14 = vpop.f32.mrb[66].mxu1  ;;  %v2036_v51 = vpop.f32.mrb[66].mxu0 }
 0x1c0   :  { %v1685_v22 = vpop.f32.mrb[67].mxu1  ;;  %v2038_v27 = vpop.f32.mrb[67].mxu0 }
 0x1c1   :  { %4659 = vst [vmem:[#allocation8 + $0x8] sm:$0xff] %v5061_v36  ;;  %4660 = vst [vmem:[#allocation8 + $0x10] sm:$0xff] %v5062_v9  ;;  %v5064_v56 = vpack.c.bf16 %v1685_v22, %v1683_v14  ;;  %v5065_v33 = vpack.c.bf16 %v2038_v27, %v2036_v51 }
 0x1c2   :  { %1948 = vmatmul.mubr.bf16.gmra.mrb[172].mxu1 %v5782_v47  ;;  %2301 = vmatmul.mubr.bf16.gmra.mrb[172].mxu0 %v5782_v47 }
 0x1c3   :  { %4662 = vst [vmem:[#allocation8 + $0x20] sm:$0xff] %v5064_v56  ;;  %4663 = vst [vmem:[#allocation8 + $0x28] sm:$0xff] %v5065_v33  ;;  %1957 = vmatprep.mubr.bf16.mxu1 %v5783_v58  ;;  %2310 = vmatprep.mubr.bf16.mxu0 %v5783_v58 }
 0x1c5   :  { %v1689_v40 = vpop.f32.mrb[68].mxu1  ;;  %v2042_v32 = vpop.f32.mrb[68].mxu0 }
 0x1c6   :  { %v1691_v37 = vpop.f32.mrb[69].mxu1  ;;  %v2044_v21 = vpop.f32.mrb[69].mxu0 }
 0x1c7   :  { %v5067_v26 = vpack.c.bf16 %v1691_v37, %v1689_v40  ;;  %v5068_v13 = vpack.c.bf16 %v2044_v21, %v2042_v32  ;;  %v1693_v16 = vpop.f32.mrb[70].mxu1  ;;  %v2046_v23 = vpop.f32.mrb[70].mxu0 }
 0x1c8   :  { %v1695_v20 = vpop.f32.mrb[71].mxu1  ;;  %v2048_v11 = vpop.f32.mrb[71].mxu0 }
 0x1c9   :  { %4665 = vst [vmem:[#allocation8 + $0x38] sm:$0xff] %v5067_v26  ;;  %4666 = vst [vmem:[#allocation8 + $0x40] sm:$0xff] %v5068_v13  ;;  %v5070_v24 = vpack.c.bf16 %v1695_v20, %v1693_v16  ;;  %v5071_v62 = vpack.c.bf16 %v2048_v11, %v2046_v23 }
 0x1ca   :  { %1958 = vmatmul.mubr.bf16.gmra.mrb[176].mxu1 %v5784_v0  ;;  %2311 = vmatmul.mubr.bf16.gmra.mrb[176].mxu0 %v5784_v0 }
 0x1cb   :  { %4668 = vst [vmem:[#allocation8 + $0x50] sm:$0xff] %v5070_v24  ;;  %4669 = vst [vmem:[#allocation8 + $0x58] sm:$0xff] %v5071_v62  ;;  %1967 = vmatprep.mubr.bf16.mxu1 %v5785_v28  ;;  %2320 = vmatprep.mubr.bf16.mxu0 %v5785_v28 }
 0x1cd   :  { %v1699_v35 = vpop.f32.mrb[72].mxu1  ;;  %v2052_v10 = vpop.f32.mrb[72].mxu0 }
 0x1ce   :  { %v1701_v15 = vpop.f32.mrb[73].mxu1  ;;  %v2054_v38 = vpop.f32.mrb[73].mxu0 }
 0x1cf   :  { %v5073_v12 = vpack.c.bf16 %v1701_v15, %v1699_v35  ;;  %v5074_v25 = vpack.c.bf16 %v2054_v38, %v2052_v10  ;;  %v1703_v29 = vpop.f32.mrb[74].mxu1  ;;  %v2056_v39 = vpop.f32.mrb[74].mxu0 }
 0x1d0   :  { %v1705_v42 = vpop.f32.mrb[75].mxu1  ;;  %v2058_v50 = vpop.f32.mrb[75].mxu0 }
 0x1d1   :  { %4671 = vst [vmem:[#allocation8 + $0x68] sm:$0xff] %v5073_v12  ;;  %4672 = vst [vmem:[#allocation8 + $0x70] sm:$0xff] %v5074_v25  ;;  %v5076_v54 = vpack.c.bf16 %v1705_v42, %v1703_v29  ;;  %v5077_v55 = vpack.c.bf16 %v2058_v50, %v2056_v39 }
 0x1d2   :  { %1968 = vmatmul.mubr.bf16.gmra.mrb[180].mxu1 %v5786_v18  ;;  %2321 = vmatmul.mubr.bf16.gmra.mrb[180].mxu0 %v5786_v18 }
 0x1d3   :  { %4674 = vst [vmem:[#allocation8 + $0x80] sm:$0xff] %v5076_v54  ;;  %4675 = vst [vmem:[#allocation8 + $0x88] sm:$0xff] %v5077_v55  ;;  %1977 = vmatprep.mubr.bf16.mxu1 %v5787_v43  ;;  %2330 = vmatprep.mubr.bf16.mxu0 %v5787_v43 }
 0x1d5   :  { %v1709_v7 = vpop.f32.mrb[76].mxu1  ;;  %v2062_v52 = vpop.f32.mrb[76].mxu0 }
 0x1d6   :  { %v1711_v63 = vpop.f32.mrb[77].mxu1  ;;  %v2064_v57 = vpop.f32.mrb[77].mxu0 }
 0x1d7   :  { %v5079_v1 = vpack.c.bf16 %v1711_v63, %v1709_v7  ;;  %v5080_v49 = vpack.c.bf16 %v2064_v57, %v2062_v52  ;;  %v1713_v3 = vpop.f32.mrb[78].mxu1  ;;  %v2066_v48 = vpop.f32.mrb[78].mxu0 }
 0x1d8   :  { %v1715_v61 = vpop.f32.mrb[79].mxu1  ;;  %v2068_v8 = vpop.f32.mrb[79].mxu0 }
 0x1d9   :  { %4677 = vst [vmem:[#allocation8 + $0x98] sm:$0xff] %v5079_v1  ;;  %4678 = vst [vmem:[#allocation8 + $0xa0] sm:$0xff] %v5080_v49  ;;  %v5082_v17 = vpack.c.bf16 %v1715_v61, %v1713_v3  ;;  %v5083_v19 = vpack.c.bf16 %v2068_v8, %v2066_v48 }
 0x1da   :  { %1978 = vmatmul.mubr.bf16.gmra.mrb[184].mxu1 %v5589_v44  ;;  %2331 = vmatmul.mubr.bf16.gmra.mrb[184].mxu0 %v5589_v44 }
 0x1db   :  { %4680 = vst [vmem:[#allocation8 + $0xb0] sm:$0xff] %v5082_v17  ;;  %4681 = vst [vmem:[#allocation8 + $0xb8] sm:$0xff] %v5083_v19  ;;  %1987 = vmatprep.mubr.bf16.mxu1 %v5593_v46  ;;  %2340 = vmatprep.mubr.bf16.mxu0 %v5593_v46 }
 0x1dd   :  { %v1719_v30 = vpop.f32.mrb[80].mxu1  ;;  %v2072_v2 = vpop.f32.mrb[80].mxu0 }
 0x1de   :  { %v1721_v6 = vpop.f32.mrb[81].mxu1  ;;  %v2074_v34 = vpop.f32.mrb[81].mxu0 }
 0x1df   :  { %v5085_v41 = vpack.c.bf16 %v1721_v6, %v1719_v30  ;;  %v5086_v45 = vpack.c.bf16 %v2074_v34, %v2072_v2  ;;  %v1723_v59 = vpop.f32.mrb[82].mxu1  ;;  %v2076_v4 = vpop.f32.mrb[82].mxu0 }
 0x1e0   :  { %v1725_v60 = vpop.f32.mrb[83].mxu1  ;;  %v2078_v5 = vpop.f32.mrb[83].mxu0 }
 0x1e1   :  { %4683 = vst [vmem:[#allocation8 + $0xc8] sm:$0xff] %v5085_v41  ;;  %4684 = vst [vmem:[#allocation8 + $0xd0] sm:$0xff] %v5086_v45  ;;  %v5088_v31 = vpack.c.bf16 %v1725_v60, %v1723_v59  ;;  %v5089_v44 = vpack.c.bf16 %v2078_v5, %v2076_v4 }
 0x1e2   :  { %1988 = vmatmul.mubr.bf16.gmra.mrb[188].mxu1 %v5601_v53  ;;  %2341 = vmatmul.mubr.bf16.gmra.mrb[188].mxu0 %v5601_v53 }
 0x1e3   :  { %4686 = vst [vmem:[#allocation8 + $0xe0] sm:$0xff] %v5088_v31  ;;  %4687 = vst [vmem:[#allocation8 + $0xe8] sm:$0xff] %v5089_v44 }
 0x1e5   :  { %v1729_v46 = vpop.f32.mrb[84].mxu1  ;;  %v2082_v36 = vpop.f32.mrb[84].mxu0 }
 0x1e6   :  { %v1731_v9 = vpop.f32.mrb[85].mxu1  ;;  %v2084_v14 = vpop.f32.mrb[85].mxu0 }
 0x1e7   :  { %v5091_v51 = vpack.c.bf16 %v1731_v9, %v1729_v46  ;;  %v5092_v22 = vpack.c.bf16 %v2084_v14, %v2082_v36  ;;  %v1733_v27 = vpop.f32.mrb[86].mxu1  ;;  %v2086_v56 = vpop.f32.mrb[86].mxu0 }
 0x1e8   :  { %v1735_v33 = vpop.f32.mrb[87].mxu1  ;;  %v2088_v47 = vpop.f32.mrb[87].mxu0 }
 0x1e9   :  { %4689 = vst [vmem:[#allocation8 + $0xf8] sm:$0xff] %v5091_v51  ;;  %4690 = vst [vmem:[#allocation8 + $0x100] sm:$0xff] %v5092_v22  ;;  %v5094_v58 = vpack.c.bf16 %v1735_v33, %v1733_v27  ;;  %v5095_v40 = vpack.c.bf16 %v2088_v47, %v2086_v56 }
 0x1eb   :  { %4692 = vst [vmem:[#allocation8 + $0x110] sm:$0xff] %v5094_v58  ;;  %4693 = vst [vmem:[#allocation8 + $0x118] sm:$0xff] %v5095_v40 }
 0x1ed   :  { %v1739_v32 = vpop.f32.mrb[88].mxu1  ;;  %v2092_v53 = vpop.f32.mrb[88].mxu0 }
 0x1ee   :  { %v1741_v37 = vpop.f32.mrb[89].mxu1  ;;  %v2094_v21 = vpop.f32.mrb[89].mxu0 }
 0x1ef   :  { %v5097_v26 = vpack.c.bf16 %v1741_v37, %v1739_v32  ;;  %v5098_v13 = vpack.c.bf16 %v2094_v21, %v2092_v53  ;;  %v1743_v16 = vpop.f32.mrb[90].mxu1  ;;  %v2096_v23 = vpop.f32.mrb[90].mxu0 }
 0x1f0   :  { %v1745_v20 = vpop.f32.mrb[91].mxu1  ;;  %v2098_v11 = vpop.f32.mrb[91].mxu0 }
 0x1f1   :  { %4695 = vst [vmem:[#allocation8 + $0x128] sm:$0xff] %v5097_v26  ;;  %4696 = vst [vmem:[#allocation8 + $0x130] sm:$0xff] %v5098_v13  ;;  %v5100_v24 = vpack.c.bf16 %v1745_v20, %v1743_v16  ;;  %v5101_v62 = vpack.c.bf16 %v2098_v11, %v2096_v23 }
 0x1f3   :  { %4698 = vst [vmem:[#allocation8 + $0x140] sm:$0xff] %v5100_v24  ;;  %4699 = vst [vmem:[#allocation8 + $0x148] sm:$0xff] %v5101_v62 }
 0x1f5   :  { %v1749_v0 = vpop.f32.mrb[92].mxu1  ;;  %v2102_v28 = vpop.f32.mrb[92].mxu0 }
 0x1f6   :  { %v1751_v35 = vpop.f32.mrb[93].mxu1  ;;  %v2104_v10 = vpop.f32.mrb[93].mxu0 }
 0x1f7   :  { %v5103_v15 = vpack.c.bf16 %v1751_v35, %v1749_v0  ;;  %v5104_v38 = vpack.c.bf16 %v2104_v10, %v2102_v28  ;;  %v1753_v12 = vpop.f32.mrb[94].mxu1  ;;  %v2106_v25 = vpop.f32.mrb[94].mxu0 }
 0x1f8   :  { %v1755_v29 = vpop.f32.mrb[95].mxu1  ;;  %v2108_v39 = vpop.f32.mrb[95].mxu0 }
 0x1f9   :  { %4701 = vst [vmem:[#allocation8 + $0x158] sm:$0xff] %v5103_v15  ;;  %4702 = vst [vmem:[#allocation8 + $0x160] sm:$0xff] %v5104_v38  ;;  %v5106_v42 = vpack.c.bf16 %v1755_v29, %v1753_v12  ;;  %v5107_v50 = vpack.c.bf16 %v2108_v39, %v2106_v25 }
 0x1fb   :  { %4704 = vst [vmem:[#allocation8 + $0x170] sm:$0xff] %v5106_v42  ;;  %4705 = vst [vmem:[#allocation8 + $0x178] sm:$0xff] %v5107_v50 }
 0x1fd   :  { %v1759_v54 = vpop.f32.mrb[96].mxu1  ;;  %v2112_v55 = vpop.f32.mrb[96].mxu0 }
 0x1fe   :  { %v1761_v18 = vpop.f32.mrb[97].mxu1  ;;  %v2114_v43 = vpop.f32.mrb[97].mxu0 }
 0x1ff   :  { %v5109_v7 = vpack.c.bf16 %v1761_v18, %v1759_v54  ;;  %v5110_v52 = vpack.c.bf16 %v2114_v43, %v2112_v55  ;;  %v1763_v63 = vpop.f32.mrb[98].mxu1  ;;  %v2116_v57 = vpop.f32.mrb[98].mxu0 }
 0x200   :  { %v1765_v1 = vpop.f32.mrb[99].mxu1  ;;  %v2118_v49 = vpop.f32.mrb[99].mxu0 }
 0x201   :  { %4707 = vst [vmem:[#allocation8 + $0x188] sm:$0xff] %v5109_v7  ;;  %4708 = vst [vmem:[#allocation8 + $0x190] sm:$0xff] %v5110_v52  ;;  %v5112_v3 = vpack.c.bf16 %v1765_v1, %v1763_v63  ;;  %v5113_v48 = vpack.c.bf16 %v2118_v49, %v2116_v57 }
 0x203   :  { %4710 = vst [vmem:[#allocation8 + $0x1a0] sm:$0xff] %v5112_v3  ;;  %4711 = vst [vmem:[#allocation8 + $0x1a8] sm:$0xff] %v5113_v48 }
 0x205   :  { %v1769_v61 = vpop.f32.mrb[100].mxu1  ;;  %v2122_v8 = vpop.f32.mrb[100].mxu0 }
 0x206   :  { %v1771_v17 = vpop.f32.mrb[101].mxu1  ;;  %v2124_v19 = vpop.f32.mrb[101].mxu0 }
 0x207   :  { %v5115_v30 = vpack.c.bf16 %v1771_v17, %v1769_v61  ;;  %v5116_v2 = vpack.c.bf16 %v2124_v19, %v2122_v8  ;;  %v1773_v6 = vpop.f32.mrb[102].mxu1  ;;  %v2126_v34 = vpop.f32.mrb[102].mxu0 }
 0x208   :  { %v1775_v41 = vpop.f32.mrb[103].mxu1  ;;  %v2128_v45 = vpop.f32.mrb[103].mxu0 }
 0x209   :  { %4713 = vst [vmem:[#allocation8 + $0x1b8] sm:$0xff] %v5115_v30  ;;  %4714 = vst [vmem:[#allocation8 + $0x1c0] sm:$0xff] %v5116_v2  ;;  %v5118_v59 = vpack.c.bf16 %v1775_v41, %v1773_v6  ;;  %v5119_v4 = vpack.c.bf16 %v2128_v45, %v2126_v34 }
 0x20b   :  { %4716 = vst [vmem:[#allocation8 + $0x1d0] sm:$0xff] %v5118_v59  ;;  %4717 = vst [vmem:[#allocation8 + $0x1d8] sm:$0xff] %v5119_v4 }
 0x20d   :  { %v1779_v60 = vpop.f32.mrb[104].mxu1  ;;  %v2132_v5 = vpop.f32.mrb[104].mxu0 }
 0x20e   :  { %v1781_v31 = vpop.f32.mrb[105].mxu1  ;;  %v2134_v44 = vpop.f32.mrb[105].mxu0 }
 0x20f   :  { %v5121_v46 = vpack.c.bf16 %v1781_v31, %v1779_v60  ;;  %v5122_v36 = vpack.c.bf16 %v2134_v44, %v2132_v5  ;;  %v1783_v9 = vpop.f32.mrb[106].mxu1  ;;  %v2136_v14 = vpop.f32.mrb[106].mxu0 }
 0x210   :  { %v1785_v51 = vpop.f32.mrb[107].mxu1  ;;  %v2138_v22 = vpop.f32.mrb[107].mxu0 }
 0x211   :  { %4719 = vst [vmem:[#allocation8 + $0x1e8] sm:$0xff] %v5121_v46  ;;  %4720 = vst [vmem:[#allocation8 + $0x1f0] sm:$0xff] %v5122_v36  ;;  %v5124_v27 = vpack.c.bf16 %v1785_v51, %v1783_v9  ;;  %v5125_v56 = vpack.c.bf16 %v2138_v22, %v2136_v14 }
 0x213   :  { %4722 = vst [vmem:[#allocation8 + $0x200] sm:$0xff] %v5124_v27  ;;  %4723 = vst [vmem:[#allocation8 + $0x208] sm:$0xff] %v5125_v56 }
 0x215   :  { %v1789_v33 = vpop.f32.mrb[108].mxu1  ;;  %v2142_v47 = vpop.f32.mrb[108].mxu0 }
 0x216   :  { %v1791_v58 = vpop.f32.mrb[109].mxu1  ;;  %v2144_v40 = vpop.f32.mrb[109].mxu0 }
 0x217   :  { %v5127_v32 = vpack.c.bf16 %v1791_v58, %v1789_v33  ;;  %v5128_v53 = vpack.c.bf16 %v2144_v40, %v2142_v47  ;;  %v1793_v37 = vpop.f32.mrb[110].mxu1  ;;  %v2146_v21 = vpop.f32.mrb[110].mxu0 }
 0x218   :  { %v1795_v26 = vpop.f32.mrb[111].mxu1  ;;  %v2148_v13 = vpop.f32.mrb[111].mxu0 }
 0x219   :  { %4725 = vst [vmem:[#allocation8 + $0x218] sm:$0xff] %v5127_v32  ;;  %4726 = vst [vmem:[#allocation8 + $0x220] sm:$0xff] %v5128_v53  ;;  %v5130_v16 = vpack.c.bf16 %v1795_v26, %v1793_v37  ;;  %v5131_v23 = vpack.c.bf16 %v2148_v13, %v2146_v21 }
 0x21b   :  { %4728 = vst [vmem:[#allocation8 + $0x230] sm:$0xff] %v5130_v16  ;;  %4729 = vst [vmem:[#allocation8 + $0x238] sm:$0xff] %v5131_v23 }
 0x21d   :  { %v1799_v20 = vpop.f32.mrb[112].mxu1  ;;  %v2152_v11 = vpop.f32.mrb[112].mxu0 }
 0x21e   :  { %v1801_v24 = vpop.f32.mrb[113].mxu1  ;;  %v2154_v62 = vpop.f32.mrb[113].mxu0 }
 0x21f   :  { %v5133_v0 = vpack.c.bf16 %v1801_v24, %v1799_v20  ;;  %v5134_v28 = vpack.c.bf16 %v2154_v62, %v2152_v11  ;;  %v1803_v35 = vpop.f32.mrb[114].mxu1  ;;  %v2156_v10 = vpop.f32.mrb[114].mxu0 }
 0x220   :  { %v1805_v15 = vpop.f32.mrb[115].mxu1  ;;  %v2158_v38 = vpop.f32.mrb[115].mxu0 }
 0x221   :  { %4731 = vst [vmem:[#allocation8 + $0x248] sm:$0xff] %v5133_v0  ;;  %4732 = vst [vmem:[#allocation8 + $0x250] sm:$0xff] %v5134_v28  ;;  %v5136_v12 = vpack.c.bf16 %v1805_v15, %v1803_v35  ;;  %v5137_v25 = vpack.c.bf16 %v2158_v38, %v2156_v10 }
 0x223   :  { %4734 = vst [vmem:[#allocation8 + $0x260] sm:$0xff] %v5136_v12  ;;  %4735 = vst [vmem:[#allocation8 + $0x268] sm:$0xff] %v5137_v25 }
 0x225   :  { %v1809_v29 = vpop.f32.mrb[116].mxu1  ;;  %v2162_v39 = vpop.f32.mrb[116].mxu0 }
 0x226   :  { %v1811_v42 = vpop.f32.mrb[117].mxu1  ;;  %v2164_v50 = vpop.f32.mrb[117].mxu0 }
 0x227   :  { %v5139_v54 = vpack.c.bf16 %v1811_v42, %v1809_v29  ;;  %v5140_v55 = vpack.c.bf16 %v2164_v50, %v2162_v39  ;;  %v1813_v18 = vpop.f32.mrb[118].mxu1  ;;  %v2166_v43 = vpop.f32.mrb[118].mxu0 }
 0x228   :  { %v1815_v7 = vpop.f32.mrb[119].mxu1  ;;  %v2168_v52 = vpop.f32.mrb[119].mxu0 }
 0x229   :  { %4737 = vst [vmem:[#allocation8 + $0x278] sm:$0xff] %v5139_v54  ;;  %4738 = vst [vmem:[#allocation8 + $0x280] sm:$0xff] %v5140_v55  ;;  %v5142_v63 = vpack.c.bf16 %v1815_v7, %v1813_v18  ;;  %v5143_v57 = vpack.c.bf16 %v2168_v52, %v2166_v43 }
 0x22b   :  { %4740 = vst [vmem:[#allocation8 + $0x290] sm:$0xff] %v5142_v63  ;;  %4741 = vst [vmem:[#allocation8 + $0x298] sm:$0xff] %v5143_v57 }
 0x22d   :  { %v1819_v1 = vpop.f32.mrb[120].mxu1  ;;  %v2172_v49 = vpop.f32.mrb[120].mxu0 }
 0x22e   :  { %v1821_v3 = vpop.f32.mrb[121].mxu1  ;;  %v2174_v48 = vpop.f32.mrb[121].mxu0 }
 0x22f   :  { %v5145_v61 = vpack.c.bf16 %v1821_v3, %v1819_v1  ;;  %v5146_v8 = vpack.c.bf16 %v2174_v48, %v2172_v49  ;;  %v1823_v17 = vpop.f32.mrb[122].mxu1  ;;  %v2176_v19 = vpop.f32.mrb[122].mxu0 }
 0x230   :  { %v1825_v30 = vpop.f32.mrb[123].mxu1  ;;  %v2178_v2 = vpop.f32.mrb[123].mxu0 }
 0x231   :  { %4743 = vst [vmem:[#allocation8 + $0x2a8] sm:$0xff] %v5145_v61  ;;  %4744 = vst [vmem:[#allocation8 + $0x2b0] sm:$0xff] %v5146_v8  ;;  %v5148_v6 = vpack.c.bf16 %v1825_v30, %v1823_v17  ;;  %v5149_v34 = vpack.c.bf16 %v2178_v2, %v2176_v19 }
 0x233   :  { %4746 = vst [vmem:[#allocation8 + $0x2c0] sm:$0xff] %v5148_v6  ;;  %4747 = vst [vmem:[#allocation8 + $0x2c8] sm:$0xff] %v5149_v34 }
 0x235   :  { %v1829_v41 = vpop.f32.mrb[124].mxu1  ;;  %v2182_v45 = vpop.f32.mrb[124].mxu0 }
 0x236   :  { %v1831_v59 = vpop.f32.mrb[125].mxu1  ;;  %v2184_v4 = vpop.f32.mrb[125].mxu0 }
 0x237   :  { %v5151_v60 = vpack.c.bf16 %v1831_v59, %v1829_v41  ;;  %v5152_v5 = vpack.c.bf16 %v2184_v4, %v2182_v45  ;;  %v1833_v31 = vpop.f32.mrb[126].mxu1  ;;  %v2186_v44 = vpop.f32.mrb[126].mxu0 }
 0x238   :  { %v1835_v46 = vpop.f32.mrb[127].mxu1  ;;  %v2188_v36 = vpop.f32.mrb[127].mxu0 }
 0x239   :  { %4749 = vst [vmem:[#allocation8 + $0x2d8] sm:$0xff] %v5151_v60  ;;  %4750 = vst [vmem:[#allocation8 + $0x2e0] sm:$0xff] %v5152_v5  ;;  %v5154_v9 = vpack.c.bf16 %v1835_v46, %v1833_v31  ;;  %v5155_v14 = vpack.c.bf16 %v2188_v36, %v2186_v44 }
 0x23b   :  { %4752 = vst [vmem:[#allocation8 + $0x2f0] sm:$0xff] %v5154_v9  ;;  %4753 = vst [vmem:[#allocation8 + $0x2f8] sm:$0xff] %v5155_v14 }
 0x23d   :  { %v1839_v51 = vpop.f32.mrb[128].mxu1  ;;  %v2192_v22 = vpop.f32.mrb[128].mxu0 }
 0x23e   :  { %v1841_v27 = vpop.f32.mrb[129].mxu1  ;;  %v2194_v56 = vpop.f32.mrb[129].mxu0 }
 0x23f   :  { %v5157_v33 = vpack.c.bf16 %v1841_v27, %v1839_v51  ;;  %v5158_v47 = vpack.c.bf16 %v2194_v56, %v2192_v22  ;;  %v1843_v58 = vpop.f32.mrb[130].mxu1  ;;  %v2196_v40 = vpop.f32.mrb[130].mxu0 }
 0x240   :  { %v1845_v32 = vpop.f32.mrb[131].mxu1  ;;  %v2198_v53 = vpop.f32.mrb[131].mxu0 }
 0x241   :  { %4755 = vst [vmem:[#allocation8 + $0x308] sm:$0xff] %v5157_v33  ;;  %4756 = vst [vmem:[#allocation8 + $0x310] sm:$0xff] %v5158_v47  ;;  %v5160_v37 = vpack.c.bf16 %v1845_v32, %v1843_v58  ;;  %v5161_v21 = vpack.c.bf16 %v2198_v53, %v2196_v40 }
 0x243   :  { %4758 = vst [vmem:[#allocation8 + $0x320] sm:$0xff] %v5160_v37  ;;  %4759 = vst [vmem:[#allocation8 + $0x328] sm:$0xff] %v5161_v21 }
 0x245   :  { %v1849_v26 = vpop.f32.mrb[132].mxu1  ;;  %v2202_v13 = vpop.f32.mrb[132].mxu0 }
 0x246   :  { %v1851_v16 = vpop.f32.mrb[133].mxu1  ;;  %v2204_v23 = vpop.f32.mrb[133].mxu0 }
 0x247   :  { %v5163_v20 = vpack.c.bf16 %v1851_v16, %v1849_v26  ;;  %v5164_v11 = vpack.c.bf16 %v2204_v23, %v2202_v13  ;;  %v1853_v24 = vpop.f32.mrb[134].mxu1  ;;  %v2206_v62 = vpop.f32.mrb[134].mxu0 }
 0x248   :  { %v1855_v0 = vpop.f32.mrb[135].mxu1  ;;  %v2208_v28 = vpop.f32.mrb[135].mxu0 }
 0x249   :  { %4761 = vst [vmem:[#allocation8 + $0x338] sm:$0xff] %v5163_v20  ;;  %4762 = vst [vmem:[#allocation8 + $0x340] sm:$0xff] %v5164_v11  ;;  %v5166_v35 = vpack.c.bf16 %v1855_v0, %v1853_v24  ;;  %v5167_v10 = vpack.c.bf16 %v2208_v28, %v2206_v62 }
 0x24b   :  { %4764 = vst [vmem:[#allocation8 + $0x350] sm:$0xff] %v5166_v35  ;;  %4765 = vst [vmem:[#allocation8 + $0x358] sm:$0xff] %v5167_v10 }
 0x24d   :  { %v1859_v15 = vpop.f32.mrb[136].mxu1  ;;  %v2212_v38 = vpop.f32.mrb[136].mxu0 }
 0x24e   :  { %v1861_v12 = vpop.f32.mrb[137].mxu1  ;;  %v2214_v25 = vpop.f32.mrb[137].mxu0 }
 0x24f   :  { %v5169_v29 = vpack.c.bf16 %v1861_v12, %v1859_v15  ;;  %v5170_v39 = vpack.c.bf16 %v2214_v25, %v2212_v38  ;;  %v1863_v42 = vpop.f32.mrb[138].mxu1  ;;  %v2216_v50 = vpop.f32.mrb[138].mxu0 }
 0x250   :  { %v1865_v54 = vpop.f32.mrb[139].mxu1  ;;  %v2218_v55 = vpop.f32.mrb[139].mxu0 }
 0x251   :  { %4767 = vst [vmem:[#allocation8 + $0x368] sm:$0xff] %v5169_v29  ;;  %4768 = vst [vmem:[#allocation8 + $0x370] sm:$0xff] %v5170_v39  ;;  %v5172_v18 = vpack.c.bf16 %v1865_v54, %v1863_v42  ;;  %v5173_v43 = vpack.c.bf16 %v2218_v55, %v2216_v50 }
 0x253   :  { %4770 = vst [vmem:[#allocation8 + $0x380] sm:$0xff] %v5172_v18  ;;  %4771 = vst [vmem:[#allocation8 + $0x388] sm:$0xff] %v5173_v43 }
 0x255   :  { %v1869_v7 = vpop.f32.mrb[140].mxu1  ;;  %v2222_v52 = vpop.f32.mrb[140].mxu0 }
 0x256   :  { %v1871_v63 = vpop.f32.mrb[141].mxu1  ;;  %v2224_v57 = vpop.f32.mrb[141].mxu0 }
 0x257   :  { %v5175_v1 = vpack.c.bf16 %v1871_v63, %v1869_v7  ;;  %v5176_v49 = vpack.c.bf16 %v2224_v57, %v2222_v52  ;;  %v1873_v3 = vpop.f32.mrb[142].mxu1  ;;  %v2226_v48 = vpop.f32.mrb[142].mxu0 }
 0x258   :  { %v1875_v61 = vpop.f32.mrb[143].mxu1  ;;  %v2228_v8 = vpop.f32.mrb[143].mxu0 }
 0x259   :  { %4773 = vst [vmem:[#allocation8 + $0x398] sm:$0xff] %v5175_v1  ;;  %4774 = vst [vmem:[#allocation8 + $0x3a0] sm:$0xff] %v5176_v49  ;;  %v5178_v17 = vpack.c.bf16 %v1875_v61, %v1873_v3  ;;  %v5179_v19 = vpack.c.bf16 %v2228_v8, %v2226_v48 }
 0x25b   :  { %4776 = vst [vmem:[#allocation8 + $0x3b0] sm:$0xff] %v5178_v17  ;;  %4777 = vst [vmem:[#allocation8 + $0x3b8] sm:$0xff] %v5179_v19 }
 0x25d   :  { %v1879_v30 = vpop.f32.mrb[144].mxu1  ;;  %v2232_v2 = vpop.f32.mrb[144].mxu0 }
 0x25e   :  { %v1881_v6 = vpop.f32.mrb[145].mxu1  ;;  %v2234_v34 = vpop.f32.mrb[145].mxu0 }
 0x25f   :  { %v5181_v41 = vpack.c.bf16 %v1881_v6, %v1879_v30  ;;  %v5182_v45 = vpack.c.bf16 %v2234_v34, %v2232_v2  ;;  %v1883_v59 = vpop.f32.mrb[146].mxu1  ;;  %v2236_v4 = vpop.f32.mrb[146].mxu0 }
 0x260   :  { %v1885_v60 = vpop.f32.mrb[147].mxu1  ;;  %v2238_v5 = vpop.f32.mrb[147].mxu0 }
 0x261   :  { %4779 = vst [vmem:[#allocation8 + $0x3c8] sm:$0xff] %v5181_v41  ;;  %4780 = vst [vmem:[#allocation8 + $0x3d0] sm:$0xff] %v5182_v45  ;;  %v5184_v31 = vpack.c.bf16 %v1885_v60, %v1883_v59  ;;  %v5185_v44 = vpack.c.bf16 %v2238_v5, %v2236_v4 }
 0x263   :  { %4782 = vst [vmem:[#allocation8 + $0x3e0] sm:$0xff] %v5184_v31  ;;  %4783 = vst [vmem:[#allocation8 + $0x3e8] sm:$0xff] %v5185_v44 }
 0x265   :  { %v1889_v46 = vpop.f32.mrb[148].mxu1  ;;  %v2242_v36 = vpop.f32.mrb[148].mxu0 }
 0x266   :  { %v1891_v9 = vpop.f32.mrb[149].mxu1  ;;  %v2244_v14 = vpop.f32.mrb[149].mxu0 }
 0x267   :  { %v5187_v51 = vpack.c.bf16 %v1891_v9, %v1889_v46  ;;  %v5188_v22 = vpack.c.bf16 %v2244_v14, %v2242_v36  ;;  %v1893_v27 = vpop.f32.mrb[150].mxu1  ;;  %v2246_v56 = vpop.f32.mrb[150].mxu0 }
 0x268   :  { %v1895_v33 = vpop.f32.mrb[151].mxu1  ;;  %v2248_v47 = vpop.f32.mrb[151].mxu0 }
 0x269   :  { %4785 = vst [vmem:[#allocation8 + $0x3f8] sm:$0xff] %v5187_v51  ;;  %4786 = vst [vmem:[#allocation8 + $0x400] sm:$0xff] %v5188_v22  ;;  %v5190_v58 = vpack.c.bf16 %v1895_v33, %v1893_v27  ;;  %v5191_v40 = vpack.c.bf16 %v2248_v47, %v2246_v56 }
 0x26b   :  { %4788 = vst [vmem:[#allocation8 + $0x410] sm:$0xff] %v5190_v58  ;;  %4789 = vst [vmem:[#allocation8 + $0x418] sm:$0xff] %v5191_v40 }
 0x26d   :  { %v1899_v32 = vpop.f32.mrb[152].mxu1  ;;  %v2252_v53 = vpop.f32.mrb[152].mxu0 }
 0x26e   :  { %v1901_v37 = vpop.f32.mrb[153].mxu1  ;;  %v2254_v21 = vpop.f32.mrb[153].mxu0 }
 0x26f   :  { %v5193_v26 = vpack.c.bf16 %v1901_v37, %v1899_v32  ;;  %v5194_v13 = vpack.c.bf16 %v2254_v21, %v2252_v53  ;;  %v1903_v16 = vpop.f32.mrb[154].mxu1  ;;  %v2256_v23 = vpop.f32.mrb[154].mxu0 }
 0x270   :  { %v1905_v20 = vpop.f32.mrb[155].mxu1  ;;  %v2258_v11 = vpop.f32.mrb[155].mxu0 }
 0x271   :  { %4791 = vst [vmem:[#allocation8 + $0x428] sm:$0xff] %v5193_v26  ;;  %4792 = vst [vmem:[#allocation8 + $0x430] sm:$0xff] %v5194_v13  ;;  %v5196_v24 = vpack.c.bf16 %v1905_v20, %v1903_v16  ;;  %v5197_v62 = vpack.c.bf16 %v2258_v11, %v2256_v23 }
 0x273   :  { %4794 = vst [vmem:[#allocation8 + $0x440] sm:$0xff] %v5196_v24  ;;  %4795 = vst [vmem:[#allocation8 + $0x448] sm:$0xff] %v5197_v62 }
 0x275   :  { %v1909_v0 = vpop.f32.mrb[156].mxu1  ;;  %v2262_v28 = vpop.f32.mrb[156].mxu0 }
 0x276   :  { %v1911_v35 = vpop.f32.mrb[157].mxu1  ;;  %v2264_v10 = vpop.f32.mrb[157].mxu0 }
 0x277   :  { %v5199_v15 = vpack.c.bf16 %v1911_v35, %v1909_v0  ;;  %v5200_v38 = vpack.c.bf16 %v2264_v10, %v2262_v28  ;;  %v1913_v12 = vpop.f32.mrb[158].mxu1  ;;  %v2266_v25 = vpop.f32.mrb[158].mxu0 }
 0x278   :  { %v1915_v29 = vpop.f32.mrb[159].mxu1  ;;  %v2268_v39 = vpop.f32.mrb[159].mxu0 }
 0x279   :  { %4797 = vst [vmem:[#allocation8 + $0x458] sm:$0xff] %v5199_v15  ;;  %4798 = vst [vmem:[#allocation8 + $0x460] sm:$0xff] %v5200_v38  ;;  %v5202_v42 = vpack.c.bf16 %v1915_v29, %v1913_v12  ;;  %v5203_v50 = vpack.c.bf16 %v2268_v39, %v2266_v25 }
 0x27b   :  { %4800 = vst [vmem:[#allocation8 + $0x470] sm:$0xff] %v5202_v42  ;;  %4801 = vst [vmem:[#allocation8 + $0x478] sm:$0xff] %v5203_v50 }
 0x27d   :  { %v1919_v54 = vpop.f32.mrb[160].mxu1  ;;  %v2272_v55 = vpop.f32.mrb[160].mxu0 }
 0x27e   :  { %v1921_v18 = vpop.f32.mrb[161].mxu1  ;;  %v2274_v43 = vpop.f32.mrb[161].mxu0 }
 0x27f   :  { %v5205_v7 = vpack.c.bf16 %v1921_v18, %v1919_v54  ;;  %v5206_v52 = vpack.c.bf16 %v2274_v43, %v2272_v55  ;;  %v1923_v63 = vpop.f32.mrb[162].mxu1  ;;  %v2276_v57 = vpop.f32.mrb[162].mxu0 }
 0x280   :  { %v1925_v1 = vpop.f32.mrb[163].mxu1  ;;  %v2278_v49 = vpop.f32.mrb[163].mxu0 }
 0x281   :  { %4803 = vst [vmem:[#allocation8 + $0x488] sm:$0xff] %v5205_v7  ;;  %4804 = vst [vmem:[#allocation8 + $0x490] sm:$0xff] %v5206_v52  ;;  %v5208_v3 = vpack.c.bf16 %v1925_v1, %v1923_v63  ;;  %v5209_v48 = vpack.c.bf16 %v2278_v49, %v2276_v57 }
 0x283   :  { %4806 = vst [vmem:[#allocation8 + $0x4a0] sm:$0xff] %v5208_v3  ;;  %4807 = vst [vmem:[#allocation8 + $0x4a8] sm:$0xff] %v5209_v48 }
 0x285   :  { %v1929_v61 = vpop.f32.mrb[164].mxu1  ;;  %v2282_v8 = vpop.f32.mrb[164].mxu0 }
 0x286   :  { %v1931_v17 = vpop.f32.mrb[165].mxu1  ;;  %v2284_v19 = vpop.f32.mrb[165].mxu0 }
 0x287   :  { %v5211_v30 = vpack.c.bf16 %v1931_v17, %v1929_v61  ;;  %v5212_v2 = vpack.c.bf16 %v2284_v19, %v2282_v8  ;;  %v1933_v6 = vpop.f32.mrb[166].mxu1  ;;  %v2286_v34 = vpop.f32.mrb[166].mxu0 }
 0x288   :  { %v1935_v41 = vpop.f32.mrb[167].mxu1  ;;  %v2288_v45 = vpop.f32.mrb[167].mxu0 }
 0x289   :  { %4809 = vst [vmem:[#allocation8 + $0x4b8] sm:$0xff] %v5211_v30  ;;  %4810 = vst [vmem:[#allocation8 + $0x4c0] sm:$0xff] %v5212_v2  ;;  %v5214_v59 = vpack.c.bf16 %v1935_v41, %v1933_v6  ;;  %v5215_v4 = vpack.c.bf16 %v2288_v45, %v2286_v34 }
 0x28b   :  { %4812 = vst [vmem:[#allocation8 + $0x4d0] sm:$0xff] %v5214_v59  ;;  %4813 = vst [vmem:[#allocation8 + $0x4d8] sm:$0xff] %v5215_v4 }
 0x28d   :  { %v1939_v60 = vpop.f32.mrb[168].mxu1  ;;  %v2292_v5 = vpop.f32.mrb[168].mxu0 }
 0x28e   :  { %v1941_v31 = vpop.f32.mrb[169].mxu1  ;;  %v2294_v44 = vpop.f32.mrb[169].mxu0 }
 0x28f   :  { %v5217_v46 = vpack.c.bf16 %v1941_v31, %v1939_v60  ;;  %v5218_v36 = vpack.c.bf16 %v2294_v44, %v2292_v5  ;;  %v1943_v9 = vpop.f32.mrb[170].mxu1  ;;  %v2296_v14 = vpop.f32.mrb[170].mxu0 }
 0x290   :  { %v1945_v51 = vpop.f32.mrb[171].mxu1  ;;  %v2298_v22 = vpop.f32.mrb[171].mxu0 }
 0x291   :  { %4815 = vst [vmem:[#allocation8 + $0x4e8] sm:$0xff] %v5217_v46  ;;  %4816 = vst [vmem:[#allocation8 + $0x4f0] sm:$0xff] %v5218_v36  ;;  %v5220_v27 = vpack.c.bf16 %v1945_v51, %v1943_v9  ;;  %v5221_v56 = vpack.c.bf16 %v2298_v22, %v2296_v14 }
 0x293   :  { %4818 = vst [vmem:[#allocation8 + $0x500] sm:$0xff] %v5220_v27  ;;  %4819 = vst [vmem:[#allocation8 + $0x508] sm:$0xff] %v5221_v56 }
 0x295   :  { %v1949_v33 = vpop.f32.mrb[172].mxu1  ;;  %v2302_v47 = vpop.f32.mrb[172].mxu0 }
 0x296   :  { %v1951_v58 = vpop.f32.mrb[173].mxu1  ;;  %v2304_v40 = vpop.f32.mrb[173].mxu0 }
 0x297   :  { %v5223_v32 = vpack.c.bf16 %v1951_v58, %v1949_v33  ;;  %v5224_v53 = vpack.c.bf16 %v2304_v40, %v2302_v47  ;;  %v1953_v37 = vpop.f32.mrb[174].mxu1  ;;  %v2306_v21 = vpop.f32.mrb[174].mxu0 }
 0x298   :  { %v1955_v26 = vpop.f32.mrb[175].mxu1  ;;  %v2308_v13 = vpop.f32.mrb[175].mxu0 }
 0x299   :  { %4821 = vst [vmem:[#allocation8 + $0x518] sm:$0xff] %v5223_v32  ;;  %4822 = vst [vmem:[#allocation8 + $0x520] sm:$0xff] %v5224_v53  ;;  %v5226_v16 = vpack.c.bf16 %v1955_v26, %v1953_v37  ;;  %v5227_v23 = vpack.c.bf16 %v2308_v13, %v2306_v21 }
 0x29b   :  { %4824 = vst [vmem:[#allocation8 + $0x530] sm:$0xff] %v5226_v16  ;;  %4825 = vst [vmem:[#allocation8 + $0x538] sm:$0xff] %v5227_v23 }
 0x29d   :  { %v1959_v20 = vpop.f32.mrb[176].mxu1  ;;  %v2312_v11 = vpop.f32.mrb[176].mxu0 }
 0x29e   :  { %v1961_v24 = vpop.f32.mrb[177].mxu1  ;;  %v2314_v62 = vpop.f32.mrb[177].mxu0 }
 0x29f   :  { %v5229_v0 = vpack.c.bf16 %v1961_v24, %v1959_v20  ;;  %v5230_v28 = vpack.c.bf16 %v2314_v62, %v2312_v11  ;;  %v1963_v35 = vpop.f32.mrb[178].mxu1  ;;  %v2316_v10 = vpop.f32.mrb[178].mxu0 }
 0x2a0   :  { %v1965_v15 = vpop.f32.mrb[179].mxu1  ;;  %v2318_v38 = vpop.f32.mrb[179].mxu0 }
 0x2a1   :  { %4827 = vst [vmem:[#allocation8 + $0x548] sm:$0xff] %v5229_v0  ;;  %4828 = vst [vmem:[#allocation8 + $0x550] sm:$0xff] %v5230_v28  ;;  %v5232_v12 = vpack.c.bf16 %v1965_v15, %v1963_v35  ;;  %v5233_v25 = vpack.c.bf16 %v2318_v38, %v2316_v10 }
 0x2a3   :  { %4830 = vst [vmem:[#allocation8 + $0x560] sm:$0xff] %v5232_v12  ;;  %4831 = vst [vmem:[#allocation8 + $0x568] sm:$0xff] %v5233_v25 }
 0x2a5   :  { %v1969_v29 = vpop.f32.mrb[180].mxu1  ;;  %v2322_v39 = vpop.f32.mrb[180].mxu0 }
 0x2a6   :  { %v1971_v42 = vpop.f32.mrb[181].mxu1  ;;  %v2324_v50 = vpop.f32.mrb[181].mxu0 }
 0x2a7   :  { %v5235_v54 = vpack.c.bf16 %v1971_v42, %v1969_v29  ;;  %v5236_v55 = vpack.c.bf16 %v2324_v50, %v2322_v39  ;;  %v1973_v18 = vpop.f32.mrb[182].mxu1  ;;  %v2326_v43 = vpop.f32.mrb[182].mxu0 }
 0x2a8   :  { %v1975_v7 = vpop.f32.mrb[183].mxu1  ;;  %v2328_v52 = vpop.f32.mrb[183].mxu0 }
 0x2a9   :  { %4833 = vst [vmem:[#allocation8 + $0x578] sm:$0xff] %v5235_v54  ;;  %4834 = vst [vmem:[#allocation8 + $0x580] sm:$0xff] %v5236_v55  ;;  %v5238_v63 = vpack.c.bf16 %v1975_v7, %v1973_v18  ;;  %v5239_v57 = vpack.c.bf16 %v2328_v52, %v2326_v43 }
 0x2ab   :  { %4836 = vst [vmem:[#allocation8 + $0x590] sm:$0xff] %v5238_v63  ;;  %4837 = vst [vmem:[#allocation8 + $0x598] sm:$0xff] %v5239_v57 }
 0x2ad   :  { %v1979_v1 = vpop.f32.mrb[184].mxu1  ;;  %v2332_v49 = vpop.f32.mrb[184].mxu0 }
 0x2ae   :  { %v1981_v3 = vpop.f32.mrb[185].mxu1  ;;  %v2334_v48 = vpop.f32.mrb[185].mxu0 }
 0x2af   :  { %v5241_v61 = vpack.c.bf16 %v1981_v3, %v1979_v1  ;;  %v5242_v8 = vpack.c.bf16 %v2334_v48, %v2332_v49  ;;  %v1983_v17 = vpop.f32.mrb[186].mxu1  ;;  %v2336_v19 = vpop.f32.mrb[186].mxu0 }
 0x2b0   :  { %v1985_v30 = vpop.f32.mrb[187].mxu1  ;;  %v2338_v2 = vpop.f32.mrb[187].mxu0 }
 0x2b1   :  { %4839 = vst [vmem:[#allocation8 + $0x5a8] sm:$0xff] %v5241_v61  ;;  %4840 = vst [vmem:[#allocation8 + $0x5b0] sm:$0xff] %v5242_v8  ;;  %v5244_v6 = vpack.c.bf16 %v1985_v30, %v1983_v17  ;;  %v5245_v34 = vpack.c.bf16 %v2338_v2, %v2336_v19 }
 0x2b3   :  { %4842 = vst [vmem:[#allocation8 + $0x5c0] sm:$0xff] %v5244_v6  ;;  %4843 = vst [vmem:[#allocation8 + $0x5c8] sm:$0xff] %v5245_v34 }
 0x2b5   :  { %v1989_v41 = vpop.f32.mrb[188].mxu1  ;;  %v2342_v45 = vpop.f32.mrb[188].mxu0 }
 0x2b6   :  { %v1991_v59 = vpop.f32.mrb[189].mxu1  ;;  %v2344_v4 = vpop.f32.mrb[189].mxu0 }
 0x2b7   :  { %v5247_v60 = vpack.c.bf16 %v1991_v59, %v1989_v41  ;;  %v5248_v5 = vpack.c.bf16 %v2344_v4, %v2342_v45  ;;  %v1993_v31 = vpop.f32.mrb[190].mxu1  ;;  %v2346_v44 = vpop.f32.mrb[190].mxu0 }
 0x2b8   :  { %v1995_v46 = vpop.f32.mrb[191].mxu1  ;;  %v2348_v36 = vpop.f32.mrb[191].mxu0 }
 0x2b9   :  { %4845 = vst [vmem:[#allocation8 + $0x5d8] sm:$0xff] %v5247_v60  ;;  %4846 = vst [vmem:[#allocation8 + $0x5e0] sm:$0xff] %v5248_v5  ;;  %v5250_v9 = vpack.c.bf16 %v1995_v46, %v1993_v31  ;;  %v5251_v14 = vpack.c.bf16 %v2348_v36, %v2346_v44 }
 0x2bb   :  { %4848 = vst [vmem:[#allocation8 + $0x5f0] sm:$0xff] %v5250_v9  ;;  %4849 = vst [vmem:[#allocation8 + $0x5f8] sm:$0xff] %v5251_v14 }
 0x2bc   :  { %5348 = shalt.err (!%p5345_p6)
}
 0x2bd   :  { %s5349_s12 = scalar_lea.hbm %s5747_s2, 24576 }
 0x2be   :  { %p5350_p7 = scmp.ne.s32.totalorder %s5747_s2, %s5349_s12  ;;  %p5353_p8 = scmp.lt.u32.totalorder %s5349_s12, %s5747_s2 }
 0x2c0   :  { %p5355_p9 = pnand %p5353_p8, %p5350_p7 }
 0x2c2   :  { %5358 = shalt.err (!%p5355_p9)
}
 0x2c3   :  { %s5372_s17 = smov 384   ;;  %s5373_s18 = smov 24  }
 0x2c4   :  { %4861 = dma.vmem_to_hbm [thread:$0]  %s4856_s8, 24576, %s5747_s2, [#allocation5], %s5372_s17, %s5372_s17, %s5373_s18  }
 0x2c5   :  { %5363 = dma.done.wait [#allocation5], 24576  }
 0x2c6   :  { %5364 = vsyncadd [#allocation5], 4294942720 }
 0x2c7   :  { %4865 = vsyncpa [#allocation4], 1 }
 0x2c8   :  { %4866 = vsyncpa [#allocation7], 1 }
 0x2c9   :  { %4867 = vsyncpa [#allocation5], 1 }

</bundles_post_ra>
